<compile_context>
chip_gen: v5e
topology: v5e:2x2
jax: 0.10.0
libtpu: 0.0.40
codegen_flags: <defaults>
</compile_context>

<pallas_src>
import jax
import jax.numpy as jnp
from jax.experimental import pallas as pl
from jax.experimental.pallas import tpu as pltpu


def _round_up(x, m):
    return (x + m - 1) // m * m


def _choose_tile(n_pad, target):
    """Largest multiple of 128 <= target that divides n_pad (n_pad is a multiple of 128)."""
    t = max(128, min(target, n_pad) // 128 * 128)
    while n_pad % t:
        t -= 128
    return t


# ---- Stage 1: g = dinv * ( relu( dinv*(M @ (dinv*X)) @ W1 + b1 ) @ W2 )   (bf16 out) -------
def _make_stage1_kernel(resident_x, tk):
    def kernel(a_ref, x_ref, dinv_ref, w1_ref, b1_ref, w2_ref, g_ref, acc_ref):
        k = pl.program_id(1)

        @pl.when(k == 0)
        def _():
            acc_ref[...] = jnp.zeros_like(acc_ref)

        # int8 edge-count mask -> bf16 MXU operand (cheap VPU cast, hidden behind the DMA).
        a = a_ref[...].astype(jnp.float32).astype(jnp.bfloat16)
        if resident_x:
            x = x_ref[pl.ds(pl.multiple_of(k * tk, tk), tk), :]
        else:
            x = x_ref[...]
        acc_ref[...] += jnp.dot(a, x, preferred_element_type=jnp.float32)

        @pl.when(k == pl.num_programs(1) - 1)
        def _():
            # Row-side D^{-1/2} scaling (column side was folded into X in the glue).
            m = acc_ref[...] * dinv_ref[...]
            h = jnp.maximum(
                jnp.dot(m.astype(jnp.bfloat16), w1_ref[...],
                        preferred_element_type=jnp.float32) + b1_ref[...],
                0.0,
            )
            # TODO(synk): dropout (p=0.0 default) / optional BatchNorm1d not applied here.
            g = jnp.dot(h.astype(jnp.bfloat16), w2_ref[...],
                        preferred_element_type=jnp.float32)
            # Pre-scale by dinv so stage 2's N^2 matmul needs no column scaling either.
            g_ref[...] = (g * dinv_ref[...]).astype(g_ref.dtype)

    return kernel


# ---- Stage 2: out = dinv * (M @ g_scaled) + b2  (accumulates straight into o_ref) ----------
def _make_stage2_kernel(resident_g, tk):
    def kernel(a_ref, g_ref, dinv_ref, b2_ref, o_ref):
        k = pl.program_id(1)

        @pl.when(k == 0)
        def _():
            o_ref[...] = jnp.zeros_like(o_ref)

        a = a_ref[...].astype(jnp.float32).astype(jnp.bfloat16)
        if resident_g:
            g = g_ref[pl.ds(pl.multiple_of(k * tk, tk), tk), :]
        else:
            g = g_ref[...]
        o_ref[...] += jnp.dot(a, g, preferred_element_type=jnp.float32)

        @pl.when(k == pl.num_programs(1) - 1)
        def _():
            o_ref[...] = o_ref[...] * dinv_ref[...] + b2_ref[...]

    return kernel


# Keep resident operands small (double-buffered BlockSpec copies must fit v7x's 64 MiB/TC).
_RESIDENT_BYTES_LIMIT = 6 * 1024 * 1024


def gcn_x2_block(adj_counts, dinv, x, w1, b1, w2, b2, *, tm_target=512, tk_target=1024):
    """out = A_hat @ relu(A_hat @ X @ W1 + b1) @ W2 + b2, with A_hat = dinv*(A+I)*dinv."""
    n, dim_in = x.shape
    hidden = w1.shape[1]
    dim_out = w2.shape[1]

    fin_p = _round_up(dim_in, 128)
    hid_p = _round_up(hidden, 128)
    fout_p = _round_up(dim_out, 128)

    # Pad N to a multiple of the row-tile target so _choose_tile never collapses to 128.
    n_pad = _round_up(n, max(256, tm_target))
    tm = _choose_tile(n_pad, tm_target)
    if n_pad // tm < 2:                      # keep >= 2 row tiles so both v7x TCs get work
        tm = _choose_tile(n_pad, max(128, n_pad // 2))
    tk = _choose_tile(n_pad, tk_target)
    grid = (n_pad // tm, n_pad // tk)        # (row tiles -> parallel, K reduction -> arbitrary)

    # (A + I) edge-count mask streamed as int8 (exact for counts << 127); normalization folded out.
    a_p = jnp.zeros((n_pad, n_pad), jnp.int8).at[:n, :n].set(adj_counts.astype(jnp.int8))
    dinv_p = jnp.zeros((n_pad, 1), jnp.float32).at[:n, 0].set(dinv)
    # Column-side D^{-1/2} folded into X; bf16 for the MXU / HBM stream.
    x_p = jnp.zeros((n_pad, fin_p), jnp.bfloat16).at[:n, :dim_in].set(
        (x * dinv[:, None]).astype(jnp.bfloat16))
    w1_p = jnp.zeros((fin_p, hid_p), jnp.bfloat16).at[:dim_in, :hidden].set(w1.astype(jnp.bfloat16))
    b1_p = jnp.zeros((1, hid_p), jnp.float32).at[0, :hidden].set(b1)
    w2_p = jnp.zeros((hid_p, fout_p), jnp.bfloat16).at[:hidden, :dim_out].set(w2.astype(jnp.bfloat16))
    b2_p = jnp.zeros((1, fout_p), jnp.float32).at[0, :dim_out].set(b2)

    cparams = pltpu.CompilerParams(
        dimension_semantics=("parallel", "arbitrary"),
        vmem_limit_bytes=32 * 1024 * 1024,
    )

    resident_x = n_pad * fin_p * 2 <= _RESIDENT_BYTES_LIMIT
    resident_g = n_pad * fout_p * 2 <= _RESIDENT_BYTES_LIMIT
    x_spec = (pl.BlockSpec((n_pad, fin_p), lambda i, k: (0, 0)) if resident_x
              else pl.BlockSpec((tk, fin_p), lambda i, k: (k, 0)))
    g_spec = (pl.BlockSpec((n_pad, fout_p), lambda i, k: (0, 0)) if resident_g
              else pl.BlockSpec((tk, fout_p), lambda i, k: (k, 0)))

    # ---- Stage 1 ----
    g = pl.pallas_call(
        _make_stage1_kernel(resident_x, tk),
        out_shape=jax.ShapeDtypeStruct((n_pad, fout_p), jnp.bfloat16),
        grid_spec=pltpu.PrefetchScalarGridSpec(
            num_scalar_prefetch=0,
            grid=grid,
            in_specs=[
                pl.BlockSpec((tm, tk), lambda i, k: (i, k)),          # int8 mask row-panel x K-tile
                x_spec,                                               # dinv-scaled X
                pl.BlockSpec((tm, 1), lambda i, k: (i, 0)),           # dinv row tile
                pl.BlockSpec((fin_p, hid_p), lambda i, k: (0, 0)),    # W1 (bf16, resident)
                pl.BlockSpec((1, hid_p), lambda i, k: (0, 0)),        # b1
                pl.BlockSpec((hid_p, fout_p), lambda i, k: (0, 0)),   # W2 (bf16, resident)
            ],
            out_specs=pl.BlockSpec((tm, fout_p), lambda i, k: (i, 0)),
            scratch_shapes=[pltpu.VMEM((tm, fin_p), jnp.float32)],
        ),
        compiler_params=cparams,
    )(a_p, x_p, dinv_p, w1_p, b1_p, w2_p)

    # ---- Stage 2 ----
    out_p = pl.pallas_call(
        _make_stage2_kernel(resident_g, tk),
        out_shape=jax.ShapeDtypeStruct((n_pad, fout_p), jnp.float32),
        grid_spec=pltpu.PrefetchScalarGridSpec(
            num_scalar_prefetch=0,
            grid=grid,
            in_specs=[
                pl.BlockSpec((tm, tk), lambda i, k: (i, k)),          # int8 mask
                g_spec,                                               # dinv-scaled g from stage 1
                pl.BlockSpec((tm, 1), lambda i, k: (i, 0)),           # dinv row tile
                pl.BlockSpec((1, fout_p), lambda i, k: (0, 0)),       # b2
            ],
            out_specs=pl.BlockSpec((tm, fout_p), lambda i, k: (i, 0)),
        ),
        compiler_params=cparams,
    )(a_p, g, dinv_p, b2_p)

    return out_p[:n, :dim_out]


def build_gcn_mask_and_dinv(edge_index, num_nodes):
    """(A+I) edge-count mask and D^{-1/2}, matching PyG gcn_norm with unit edge weights."""
    row, col = edge_index[0], edge_index[1]               # messages flow src (row) -> dst (col)
    counts = jnp.zeros((num_nodes, num_nodes), jnp.float32)
    counts = counts.at[col, row].add(1.0)                 # A[dst, src] += 1 (duplicate edges add)
    counts = counts + jnp.eye(num_nodes, dtype=jnp.float32)
    deg = counts.sum(axis=1)                              # in-degree incl. self loop
    dinv = jnp.where(deg > 0, 1.0 / jnp.sqrt(deg), 0.0)
    return counts, dinv


def glorot(key, shape):
    fan_in, fan_out = shape
    limit = jnp.sqrt(6.0 / (fan_in + fan_out))
    return jax.random.uniform(key, shape, jnp.float32, -limit, limit)


if __name__ == "__main__":
    # Small graph consistent with the module: N nodes, dim_in features, hidden units, dim_out outs.
    N, DIM_IN, HIDDEN, DIM_OUT, E = 16, 8, 32, 16, 48

    key = jax.random.PRNGKey(0)
    k_x, k_src, k_dst, k_w1, k_w2, k_b1, k_b2 = jax.random.split(key, 7)

    x = jax.random.normal(k_x, (N, DIM_IN), jnp.float32)
    src = jax.random.randint(k_src, (E,), 0, N)
    dst = jax.random.randint(k_dst, (E,), 0, N)
    edge_index = jnp.stack([src, dst], axis=0)            # [2, E]

    # GCNConv params: weight [in, out] glorot; biases random here to exercise the bias path.
    w1 = glorot(k_w1, (DIM_IN, HIDDEN))
    b1 = 0.1 * jax.random.normal(k_b1, (HIDDEN,), jnp.float32)
    w2 = glorot(k_w2, (HIDDEN, DIM_OUT))
    b2 = 0.1 * jax.random.normal(k_b2, (DIM_OUT,), jnp.float32)

    counts, dinv = build_gcn_mask_and_dinv(edge_index, N)

    out = gcn_x2_block(counts, dinv, x, w1, b1, w2, b2)
    jax.block_until_ready(out)

    # Tight check against a reference applying the same casts / reassociation as the kernel.
    f32 = lambda v: v.astype(jnp.float32)
    bf = lambda v: f32(v.astype(jnp.bfloat16))
    m1 = (counts @ bf(x * dinv[:, None])) * dinv[:, None]
    h_ref = jnp.maximum(bf(m1) @ bf(w1) + b1, 0.0)
    g_ref = bf((bf(h_ref) @ bf(w2)) * dinv[:, None])
    ref_bf = (counts @ g_ref) * dinv[:, None] + b2
    assert jnp.allclose(out, ref_bf, atol=5e-3, rtol=5e-3), "mismatch vs bf16-aware reference"

    # Loose check against the pure-f32 module semantics.
    a_hat = dinv[:, None] * counts * dinv[None, :]
    ref32 = a_hat @ jnp.maximum(a_hat @ (x @ w1) + b1, 0.0) @ w2 + b2
    assert jnp.allclose(out, ref32, atol=5e-2, rtol=5e-2), "mismatch vs f32 reference"

    print("KERNEL_OK")
</pallas_src>

<mosaic_0001>
module attributes {stable_mosaic.version = 11 : i64} {
  func.func @kernel(%arg0: i32, %arg1: i32, %arg2: memref<256x512xi8, #tpu.memory_space<vmem>>, %arg3: memref<512x128xbf16, #tpu.memory_space<vmem>>, %arg4: memref<256x1xf32, #tpu.memory_space<vmem>>, %arg5: memref<128x128xbf16, #tpu.memory_space<vmem>>, %arg6: memref<1x128xf32, #tpu.memory_space<vmem>>, %arg7: memref<128x128xbf16, #tpu.memory_space<vmem>>, %arg8: memref<256x128xbf16, #tpu.memory_space<vmem>>, %arg9: memref<256x128xf32, #tpu.memory_space<vmem>>) attributes {dimension_semantics = [#tpu.dimension_semantics<parallel>, #tpu.dimension_semantics<arbitrary>], iteration_bounds = array<i64: 2, 1>, scalar_prefetch = 0 : i64, scratch_operands = 1 : i64, tpu.core_type = #tpu.core_type<tc>, window_params = [{transform_indices = @transform_0, window_bounds = array<i64: 256, 512>}, {pipeline_mode = #tpu.pipeline_mode<synchronous>, transform_indices = @transform_1, window_bounds = array<i64: 512, 128>}, {transform_indices = @transform_2, window_bounds = array<i64: 256, 1>}, {pipeline_mode = #tpu.pipeline_mode<synchronous>, transform_indices = @transform_3, window_bounds = array<i64: 128, 128>}, {pipeline_mode = #tpu.pipeline_mode<synchronous>, transform_indices = @transform_4, window_bounds = array<i64: 1, 128>}, {pipeline_mode = #tpu.pipeline_mode<synchronous>, transform_indices = @transform_5, window_bounds = array<i64: 128, 128>}, {transform_indices = @transform_6, window_bounds = array<i64: 256, 128>}]} {
    %c0_i32 = arith.constant 0 : i32
    %0 = arith.cmpi eq, %arg1, %c0_i32 : i32
    %1 = arith.extui %0 : i1 to i32
    %c0_i32_0 = arith.constant 0 : i32
    %2 = arith.cmpi ne, %1, %c0_i32_0 : i32
    scf.if %2 {
      %cst_9 = arith.constant 0.000000e+00 : f32
      %17 = vector.broadcast %cst_9 : f32 to vector<256x128xf32>
      %c0_10 = arith.constant 0 : index
      %c0_11 = arith.constant 0 : index
      %18 = vector.load %arg9[%c0_10, %c0_11] : memref<256x128xf32, #tpu.memory_space<vmem>>, vector<256x128xf32>
      tpu.vector_store %arg9[%c0_10, %c0_11], %17 {strides = array<i32>} : memref<256x128xf32, #tpu.memory_space<vmem>>, vector<256x128xf32>,
    } else {
    }
    %c0 = arith.constant 0 : index
    %c0_1 = arith.constant 0 : index
    %3 = vector.load %arg2[%c0, %c0_1] : memref<256x512xi8, #tpu.memory_space<vmem>>, vector<256x512xi8>
    %4 = arith.sitofp %3 : vector<256x512xi8> to vector<256x512xf32>
    %5 = arith.truncf %4 : vector<256x512xf32> to vector<256x512xbf16>
    %c512_i32 = arith.constant 512 : i32
    %6 = arith.muli %arg1, %c512_i32 : i32
    %7 = tpu.assume_multiple %6, 512 : i32
    %8 = arith.index_cast %7 : i32 to index
    %c0_2 = arith.constant 0 : index
    %9 = vector.load %arg3[%8, %c0_2] : memref<512x128xbf16, #tpu.memory_space<vmem>>, vector<512x128xbf16>
    %c0_3 = arith.constant 0 : index
    %c0_4 = arith.constant 0 : index
    %10 = vector.load %arg9[%c0_3, %c0_4] : memref<256x128xf32, #tpu.memory_space<vmem>>, vector<256x128xf32>
    %cst = arith.constant dense<0.000000e+00> : vector<256x128xf32>
    %11 = tpu.matmul %5, %9, %cst {dimension_numbers = #tpu.dot_dimension_numbers<[1], [0], [0], [1], [0, 0, 1, 1], [], []>} : vector<256x512xbf16>, vector<512x128xbf16>, vector<256x128xf32> -> vector<256x128xf32>
    %12 = arith.addf %10, %11 : vector<256x128xf32>
    %c0_5 = arith.constant 0 : index
    %c0_6 = arith.constant 0 : index
    %13 = vector.load %arg9[%c0_5, %c0_6] : memref<256x128xf32, #tpu.memory_space<vmem>>, vector<256x128xf32>
    tpu.vector_store %arg9[%c0_5, %c0_6], %12 {strides = array<i32>} : memref<256x128xf32, #tpu.memory_space<vmem>>, vector<256x128xf32>,
    %c0_i32_7 = arith.constant 0 : i32
    %14 = arith.cmpi eq, %arg1, %c0_i32_7 : i32
    %15 = arith.extui %14 : i1 to i32
    %c0_i32_8 = arith.constant 0 : i32
    %16 = arith.cmpi ne, %15, %c0_i32_8 : i32
    scf.if %16 {
      %c0_9 = arith.constant 0 : index
      %c0_10 = arith.constant 0 : index
      %17 = vector.load %arg9[%c0_9, %c0_10] : memref<256x128xf32, #tpu.memory_space<vmem>>, vector<256x128xf32>
      %c0_11 = arith.constant 0 : index
      %c0_12 = arith.constant 0 : index
      %18 = vector.load %arg4[%c0_11, %c0_12] : memref<256x1xf32, #tpu.memory_space<vmem>>, vector<256x1xf32>
      %19 = vector.broadcast %18 : vector<256x1xf32> to vector<256x128xf32>
      %20 = arith.mulf %17, %19 : vector<256x128xf32>
      %21 = arith.truncf %20 : vector<256x128xf32> to vector<256x128xbf16>
      %c0_13 = arith.constant 0 : index
      %c0_14 = arith.constant 0 : index
      %22 = vector.load %arg5[%c0_13, %c0_14] : memref<128x128xbf16, #tpu.memory_space<vmem>>, vector<128x128xbf16>
      %cst_15 = arith.constant dense<0.000000e+00> : vector<256x128xf32>
      %23 = tpu.matmul %21, %22, %cst_15 {dimension_numbers = #tpu.dot_dimension_numbers<[1], [0], [0], [1], [0, 0, 1, 1], [], []>} : vector<256x128xbf16>, vector<128x128xbf16>, vector<256x128xf32> -> vector<256x128xf32>
      %c0_16 = arith.constant 0 : index
      %c0_17 = arith.constant 0 : index
      %24 = vector.load %arg6[%c0_16, %c0_17] : memref<1x128xf32, #tpu.memory_space<vmem>>, vector<1x128xf32>
      %25 = vector.broadcast %24 : vector<1x128xf32> to vector<256x128xf32>
      %26 = arith.addf %23, %25 : vector<256x128xf32>
      %cst_18 = arith.constant 0.000000e+00 : f32
      %27 = vector.broadcast %cst_18 : f32 to vector<256x128xf32>
      %28 = arith.maximumf %26, %27 : vector<256x128xf32>
      %29 = arith.truncf %28 : vector<256x128xf32> to vector<256x128xbf16>
      %c0_19 = arith.constant 0 : index
      %c0_20 = arith.constant 0 : index
      %30 = vector.load %arg7[%c0_19, %c0_20] : memref<128x128xbf16, #tpu.memory_space<vmem>>, vector<128x128xbf16>
      %cst_21 = arith.constant dense<0.000000e+00> : vector<256x128xf32>
      %31 = tpu.matmul %29, %30, %cst_21 {dimension_numbers = #tpu.dot_dimension_numbers<[1], [0], [0], [1], [0, 0, 1, 1], [], []>} : vector<256x128xbf16>, vector<128x128xbf16>, vector<256x128xf32> -> vector<256x128xf32>
      %c0_22 = arith.constant 0 : index
      %c0_23 = arith.constant 0 : index
      %32 = vector.load %arg4[%c0_22, %c0_23] : memref<256x1xf32, #tpu.memory_space<vmem>>, vector<256x1xf32>
      %33 = vector.broadcast %32 : vector<256x1xf32> to vector<256x128xf32>
      %34 = arith.mulf %31, %33 : vector<256x128xf32>
      %35 = arith.truncf %34 : vector<256x128xf32> to vector<256x128xbf16>
      %c0_24 = arith.constant 0 : index
      %c0_25 = arith.constant 0 : index
      %36 = vector.load %arg8[%c0_24, %c0_25] : memref<256x128xbf16, #tpu.memory_space<vmem>>, vector<256x128xbf16>
      tpu.vector_store %arg8[%c0_24, %c0_25], %35 {strides = array<i32>} : memref<256x128xbf16, #tpu.memory_space<vmem>>, vector<256x128xbf16>,
    } else {
    }
    return
  }
  func.func @transform_0(%arg0: i32, %arg1: i32) -> (i32, i32) {
    %c0_i32 = arith.constant 0 : i32
    return %arg0, %arg1 : i32, i32
  }
  func.func @transform_1(%arg0: i32, %arg1: i32) -> (i32, i32) {
    %c0_i32 = arith.constant 0 : i32
    %c0_i32_0 = arith.constant 0 : i32
    %c0_i32_1 = arith.constant 0 : i32
    return %c0_i32, %c0_i32_0 : i32, i32
  }
  func.func @transform_2(%arg0: i32, %arg1: i32) -> (i32, i32) {
    %c0_i32 = arith.constant 0 : i32
    %c0_i32_0 = arith.constant 0 : i32
    return %arg0, %c0_i32 : i32, i32
  }
  func.func @transform_3(%arg0: i32, %arg1: i32) -> (i32, i32) {
    %c0_i32 = arith.constant 0 : i32
    %c0_i32_0 = arith.constant 0 : i32
    %c0_i32_1 = arith.constant 0 : i32
    return %c0_i32, %c0_i32_0 : i32, i32
  }
  func.func @transform_4(%arg0: i32, %arg1: i32) -> (i32, i32) {
    %c0_i32 = arith.constant 0 : i32
    %c0_i32_0 = arith.constant 0 : i32
    %c0_i32_1 = arith.constant 0 : i32
    return %c0_i32, %c0_i32_0 : i32, i32
  }
  func.func @transform_5(%arg0: i32, %arg1: i32) -> (i32, i32) {
    %c0_i32 = arith.constant 0 : i32
    %c0_i32_0 = arith.constant 0 : i32
    %c0_i32_1 = arith.constant 0 : i32
    return %c0_i32, %c0_i32_0 : i32, i32
  }
  func.func @transform_6(%arg0: i32, %arg1: i32) -> (i32, i32) {
    %c0_i32 = arith.constant 0 : i32
    %c0_i32_0 = arith.constant 0 : i32
    return %arg0, %c0_i32 : i32, i32
  }
}

</mosaic_0001>

<bundles_post_ra>
// kernel: tpu_custom_call.1
= control target key start
LH: loop header
LB: loop body
LE: loop exit
PB: predicated region body
PF: predicated region fallthrough
CT: control target
= control target key end

     0   :  { %s3459_s0 = inlined_call_operand.vmem [shape: s8[512,512], index: 0, kind: input, shape index: {}]   ;;  %s3460_s1 = inlined_call_operand.hbm [shape: bf16[512,128], index: 1, kind: input, shape index: {}]   ;;  %s3461_s2 = inlined_call_operand.vmem [shape: f32[512,1], index: 2, kind: input, shape index: {}]   ;;  %s3462_s3 = inlined_call_operand.hbm [shape: bf16[128,128], index: 3, kind: input, shape index: {}]   ;;  %s3463_s4 = inlined_call_operand.vmem [shape: f32[1,128], index: 4, kind: input, shape index: {}]   ;;  %s3464_s5 = inlined_call_operand.hbm [shape: bf16[128,128], index: 5, kind: input, shape index: {}]   ;;  %s3465_s6 = inlined_call_operand.hbm [shape: bf16[512,128], index: 6, kind: output, shape index: {}]  }
   0x1   :  { %3468 = sst [smem:[#allocation15_spill]] %s3462_s3 }
   0x2   :  { %11 = vsyncpa [#allocation4], 0 }
   0x3   :  { %12 = vsyncpa [#allocation7], 0 }
   0x4   :  { %13 = vsyncpa [#allocation5], 0 }
   0x5   :  { %15 = vsyncpa [#allocation5 + $0x1], 0  ;;  %s3014_s21 = smov 0   ;;  %s3016_s22 = smov 0  }
   0x6   :  { %s3018_s23 = smov 0   ;;  %s3020_s24 = smov 0  }
   0x7   :  { %s3022_s25 = smov 0   ;;  %s3024_s26 = smov 0  }
   0x8 LB: > { %3469 = sst [smem:[#allocation13_spill]] %s2965_s25  ;;  %s2323_s27 = sadd.s32 4294967295, %s2969_s26   ;;  %s2969_s26 = sphi %s3024_s26, %s21_s26   ;;  %s2965_s25 = sphi %s3022_s25, %s3478_s25   ;;  %s2961_s24 = sphi %s3020_s24, %s3477_s24   ;;  %s2957_s23 = sphi %s3018_s23, %s3481_s23   ;;  %s2953_s22 = sphi %s3016_s22, %s3480_s22   ;;  %s2949_s21 = sphi %s3014_s21, %s3479_s21  }
   0x9   : > { %s2324_s28 = sadd.s32 4294967294, %s2969_s26   ;;  %s33_s29 = sadd.s32 1, %s2965_s25 }
   0xa   : > { %s178_s30 = sadd.s32 1, %s2957_s23  ;;  %p35_p0 = scmp.ge.s32.totalorder %s33_s29, 2 }
   0xb   : > { %p188_p1 = scmp.ne.s32.totalorder %s2957_s23, %s2953_s22  ;;  %p189_p2 = scmp.eq.s32.totalorder %s2323_s27, 1 }
   0xc   : > { %p194_p3 = scmp.ne.s32.totalorder %s2953_s22, %s2949_s21  ;;  %s3483_s29 = smov (%p35_p0, %s33_s29), 0 }
   0xd   : > { %3470 = sst [smem:[#allocation14_spill]] %s3483_s29  ;;  %p3054_p4 = por %p189_p2, %p188_p1 }
   0xe   : > { %p195_p5 = scmp.eq.s32.totalorder %s2324_s28, 1  ;;  %s175_s8 = ssub.s32 %s2965_s25, %s3483_s29 }
   0xf   : > { %p2325_p6 = scmp.ge.s32.totalorder %s2969_s26, 1  ;;  %p176_p7 = scmp.eq.s32.totalorder %s175_s8, 0 }
  0x10   : > { %p3061_p8 = por %p195_p5, %p194_p3  ;;  %p202_p9 = scmp.lt.s32.totalorder %s2969_s26, 3 }
  0x11   : > { %s3067_s10 = scalar_select %p176_p7, %s2957_s23, %s178_s30  }
  0x12   : > { %p3069_p10 = pnand %p2325_p6, %p202_p9  ;;  %p3073_p11 = scmp.eq.s32.totalorder %s2323_s27, 0 }
  0x13   : > { %s3475_s3 = sld [smem:[#allocation15_spill]]  ;;  %s2971_s17 = smov [#allocation6]  }
  0x14   : > { %p2712_p12 = pneg %p3069_p10  ;;  %s229_s18 = sshll.u32 %s2971_s17, 4  ;;  %s230_s18 = int_to_ptr.vmem [resolvable:$true] %s229_s18 }
  0x15   : > { %s2972_s19 = smov 64   ;;  %s2973_s20 = smov 4  }
  0x16   : > { %p3084_p13 = pnand %p3073_p11, %p2712_p12  ;;  %s213_s30 = sshll.u32 %s3460_s1, 4  ;;  %s214_s30 = int_to_ptr.hbm [resolvable:$true] %s213_s30 }
  0x17   : > { %s2974_s8 = smov [#allocation3]   ;;  %s244_s29 = sshll.u32 %s3464_s5, 4  ;;  %s245_s29 = int_to_ptr.hbm [resolvable:$true] %s244_s29 }
  0x18   : > { %s215_s13 = sshll.u32 %s2974_s8, 4  ;;  %s2975_s17 = smov [#allocation8]   ;;  %s216_s13 = int_to_ptr.vmem [resolvable:$true] %s215_s13 }
  0x19   : > { %s227_s15 = sshll.u32 %s3475_s3, 4  ;;  %s246_s25 = sshll.u32 %s2975_s17, 4  ;;  %s228_s15 = int_to_ptr.hbm [resolvable:$true] %s227_s15  ;;  %s247_s25 = int_to_ptr.vmem [resolvable:$true] %s246_s25 }
  0x1a   : > { %2718 = dma.hbm_to_vmem [thread:$0]  (!%p3084_p13), %s228_s15, 1024, %s230_s18, [#allocation7], %s2972_s19, %s2972_s19, %s2973_s20  }
  0x1b   : > { %2715 = dma.hbm_to_vmem [thread:$0]  (!%p3084_p13), %s214_s30, 4096, %s216_s13, [#allocation4], %s2972_s19, %s2972_s19, %s2973_s20  }
  0x1c   : > { %2721 = dma.hbm_to_vmem [thread:$0]  (!%p3084_p13), %s245_s29, 1024, %s247_s25, [#allocation7], %s2972_s19, %s2972_s19, %s2973_s20  }
  0x1d   : > { %286 = sbr.rel (%p3069_p10) target bundleno = 867 (0x363), region = 44 }
  0x22   : > { %2936 = dma.done.wait (%p3073_p11), [#allocation4], 4096  }
  0x23   : > { %2938 = vsyncadd (%p3073_p11), [#allocation4], 4294963200 }
  0x24   : > { %2940 = dma.done.wait (%p3073_p11), [#allocation7], 2048  }
  0x25   : > { %2942 = vsyncadd (%p3073_p11), [#allocation7], 4294965248  ;;  %v2545_v0 = vld [vmem:[#allocation3 + $0x38] sm:$0xff]  ;;  %s2335_s3 = sshll.u32 %s2961_s24, 3  ;;  %v2544_v2 = vld [vmem:[#allocation3 + $0x30] sm:$0xff]  ;;  %s2338_s15 = sshll.u32 %s2961_s24, 5 }
  0x26   : > { %v2553_v1 = vld [vmem:[#allocation3 + $0x78] sm:$0xff]  ;;  %2682 = vmatpush.bf16.msra.mxu2 %v2545_v0  ;;  %v2552_v3 = vld [vmem:[#allocation3 + $0x70] sm:$0xff]  ;;  %1037 = vmatpush.bf16.msra.mxu0 %v2545_v0  ;;  %p339_p0 = scmp.lt.s32.totalorder %s2335_s3, 15  ;;  %v2543_v4 = vld [vmem:[#allocation3 + $0x28] sm:$0xff]  ;;  %p350_p1 = scmp.lt.s32.totalorder %s2338_s15, 63  ;;  %v2976_v61 = vmov 0  }
  0x27   : > { %2690 = vmatpush.bf16.msra.mxu3 %v2553_v1  ;;  %1126 = vmatpush.bf16.msra.mxu1 %v2553_v1  ;;  %v2551_v5 = vld [vmem:[#allocation3 + $0x68] sm:$0xff]  ;;  %v2542_v6 = vld [vmem:[#allocation3 + $0x20] sm:$0xff]  ;;  %v2541_v8 = vld [vmem:[#allocation3 + $0x18] sm:$0xff]  ;;  %s334_s30 = sand.u32 1, %s2953_s22   ;;  %s2586_s14 = sshll.u32 %s2961_s24, 7 }
  0x28   : > { %s3485_s3 = smov (!%p339_p0, %s2335_s3), 15  ;;  %v2550_v7 = vld [vmem:[#allocation3 + $0x60] sm:$0xff]  ;;  %v2549_v9 = vld [vmem:[#allocation3 + $0x58] sm:$0xff]  ;;  %v2540_v10 = vld [vmem:[#allocation3 + $0x10] sm:$0xff]  ;;  %s3487_s15 = smov (!%p350_p1, %s2338_s15), 63  ;;  %2789 = vset.pattern.permute.xlu0 %v2976_v61  ;;  %2790 = vset.pattern.permute.xlu1 %v2976_v61 }
  0x29   : > { %s2537_s25 = sshll.u32 %s3485_s3, 5  ;;  %v2548_v11 = vld [vmem:[#allocation3 + $0x50] sm:$0xff]  ;;  %v2539_v18 = vld [vmem:[#allocation3 + $0x8] sm:$0xff]  ;;  %v2538_v24 = vld [vmem:[#allocation3] sm:$0xff]  ;;  %s2339_s16 = sshll.u32 %s3487_s15, 3  ;;  %2791 = vset.pattern.permute.xlu2 %v2976_v61 }
  0x2a   : > { %2683 = vmatpush.bf16.msra.mxu2 %v2544_v2  ;;  %1038 = vmatpush.bf16.msra.mxu0 %v2544_v2  ;;  %s3114_s12 = scalar_lea.vmem %s3459_s0, %s2537_s25  ;;  %v2547_v19 = vld [vmem:[#allocation3 + $0x48] sm:$0xff]  ;;  %v2546_v25 = vld [vmem:[#allocation3 + $0x40] sm:$0xff]  ;;  %v2561_v26 = vld [vmem:[#allocation3 + $0xb8] sm:$0xff]  ;;  %s3124_s20 = scalar_lea.vmem %s3461_s2, %s2339_s16 }
  0x2b   : > { %2691 = vmatpush.bf16.msra.mxu3 %v2552_v3  ;;  %1127 = vmatpush.bf16.msra.mxu1 %v2552_v3  ;;  %v408_v12 = vld [vmem:[%s3114_s12 + $0x80] sm:$0xff]  ;;  %v409_v13 = vld [vmem:[%s3114_s12 + $0x88] sm:$0xff]  ;;  %v2569_v27 = vld [vmem:[#allocation3 + $0xf8] sm:$0xff]  ;;  %s2334_s8 = sshll.u32 %s334_s30, 7  ;;  %s2198_s25 = scalar_lea.hbm %s3465_s6, %s2586_s14 }
  0x2c   : > { %v488_v14 = vunpack.c.0.s8 %v408_v12  ;;  %v492_v15 = vunpack.c.1.s8 %v408_v12  ;;  %v489_v16 = vunpack.c.0.s8 %v409_v13  ;;  %v493_v17 = vunpack.c.1.s8 %v409_v13  ;;  %v2560_v30 = vld [vmem:[#allocation3 + $0xb0] sm:$0xff]  ;;  %v2559_v32 = vld [vmem:[#allocation3 + $0xa8] sm:$0xff]  ;;  %v2558_v44 = vld [vmem:[#allocation3 + $0xa0] sm:$0xff]  ;;  %s3359_s13 = scalar_lea.vmem [#allocation9], %s2334_s8  ;;  %s2201_s11 = sshll.u32 %s2198_s25, 4  ;;  %s2202_s11 = int_to_ptr.hbm [resolvable:$true] %s2201_s11 }
  0x2d   : > { %v2568_v31 = vld [vmem:[#allocation3 + $0xf0] sm:$0xff]  ;;  %v2567_v33 = vld [vmem:[#allocation3 + $0xe8] sm:$0xff]  ;;  %v496_v34 = vunpack.c.2.s8 %v408_v12  ;;  %v500_v35 = vunpack.c.3.s8 %v408_v12  ;;  %v497_v36 = vunpack.c.2.s8 %v409_v13  ;;  %v501_v37 = vunpack.c.3.s8 %v409_v13  ;;  %v2566_v45 = vld [vmem:[#allocation3 + $0xe0] sm:$0xff]  ;;  %s2199_s29 = sshll.u32 %s3359_s13, 4  ;;  %s2897_s15 = sshra.s32 %s2202_s11, 4  ;;  %s2200_s29 = int_to_ptr.vmem [resolvable:$true] %s2199_s29  ;;  %s2898_s15 = int_to_ptr.hbm [resolvable:$true] %s2897_s15 }
  0x2e   : > { %2684 = vmatpush.bf16.msra.mxu2 %v2543_v4  ;;  %1039 = vmatpush.bf16.msra.mxu0 %v2543_v4  ;;  %v616_v20 = vcvt.s32.f32 %v488_v14  ;;  %v620_v21 = vcvt.s32.f32 %v492_v15  ;;  %v617_v22 = vcvt.s32.f32 %v489_v16  ;;  %v621_v23 = vcvt.s32.f32 %v493_v17  ;;  %v412_v46 = vld [vmem:[%s3114_s12 + $0xa0] sm:$0xff]  ;;  %v413_v47 = vld [vmem:[%s3114_s12 + $0xa8] sm:$0xff]  ;;  %v2557_v58 = vld [vmem:[#allocation3 + $0x98] sm:$0xff]  ;;  %s2899_s24 = scalar_lea.hbm %s2898_s15, 128  ;;  %s2903_s19 = scalar_lea.hbm %s3465_s6, 256 }
  0x2f   : > { %2692 = vmatpush.bf16.msra.mxu3 %v2551_v5  ;;  %1128 = vmatpush.bf16.msra.mxu1 %v2551_v5  ;;  %v624_v38 = vcvt.s32.f32 %v496_v34  ;;  %v628_v39 = vcvt.s32.f32 %v500_v35  ;;  %v625_v40 = vcvt.s32.f32 %v497_v36  ;;  %v629_v41 = vcvt.s32.f32 %v501_v37  ;;  %v2565_v59 = vld [vmem:[#allocation3 + $0xd8] sm:$0xff]  ;;  %v1492_v60 = vld [vmem:[%s3124_s20] sm:$0xff]  ;;  %v417_v13 = vld [vmem:[%s3114_s12 + $0xc8] sm:$0xff]  ;;  %p2900_p2 = scmp.ne.s32.totalorder %s2898_s15, %s2899_s24  ;;  %p2904_p6 = scmp.lt.s32.totalorder %s2898_s15, %s3465_s6 }
  0x30   : > { %v712_v28 = vpack.c.bf16 %v620_v21, %v616_v20  ;;  %v713_v29 = vpack.c.bf16 %v621_v23, %v617_v22  ;;  %v504_v48 = vunpack.c.0.s8 %v412_v46  ;;  %v508_v49 = vunpack.c.1.s8 %v412_v46  ;;  %1526 = vperm.xlu0 %2789, %v1492_v60   ;;  %v416_v12 = vld [vmem:[%s3114_s12 + $0xc0] sm:$0xff]  ;;  %v1498_v14 = vld [vmem:[%s3124_s20 + $0x30] sm:$0xff]  ;;  %p2905_p7 = scmp.lt.s32.totalorder %s2903_s19, %s2899_s24 }
  0x31   : > { %v716_v42 = vpack.c.bf16 %v628_v39, %v624_v38  ;;  %v717_v43 = vpack.c.bf16 %v629_v41, %v625_v40  ;;  %v505_v50 = vunpack.c.0.s8 %v413_v47  ;;  %v509_v51 = vunpack.c.1.s8 %v413_v47  ;;  %v1502_v35 = vld [vmem:[%s3124_s20 + $0x50] sm:$0xff]  ;;  %v1507_v40 = vld [vmem:[%s3124_s20 + $0x78] sm:$0xff]  ;;  %p2901_p3 = pnand %p2900_p2, %p3054_p4 }
  0x32   : > { %2685 = vmatpush.bf16.msra.mxu2 %v2542_v6  ;;  %1040 = vmatpush.bf16.msra.mxu0 %v2542_v6  ;;  %v632_v52 = vcvt.s32.f32 %v504_v48  ;;  %v636_v53 = vcvt.s32.f32 %v508_v49  ;;  %v512_v62 = vunpack.c.2.s8 %v412_v46  ;;  %v516_v63 = vunpack.c.3.s8 %v412_v46  ;;  %v1493_v6 = vld [vmem:[%s3124_s20 + $0x8] sm:$0xff]  ;;  %v2562_v46 = vld [vmem:[#allocation3 + $0xc0] sm:$0xff]  ;;  %v1510_v48 = vld [vmem:[%s3124_s20 + $0x90] sm:$0xff]  ;;  %p2906_p9 = por %p2905_p7, %p2904_p6 }
  0x33   : > { %2693 = vmatpush.bf16.msra.mxu3 %v2550_v7  ;;  %1129 = vmatpush.bf16.msra.mxu1 %v2550_v7  ;;  %v633_v54 = vcvt.s32.f32 %v505_v50  ;;  %v637_v55 = vcvt.s32.f32 %v509_v51  ;;  %v513_v0 = vunpack.c.2.s8 %v413_v47  ;;  %v517_v1 = vunpack.c.3.s8 %v413_v47  ;;  %v1505_v47 = vld [vmem:[%s3124_s20 + $0x68] sm:$0xff]  ;;  %v392_v49 = vld [vmem:[%s3114_s12] sm:$0xff]  ;;  %p2902_p5 = pneg %p2901_p3 }
  0x34   : > { %v720_v56 = vpack.c.bf16 %v636_v53, %v632_v52  ;;  %v640_v2 = vcvt.s32.f32 %v512_v62  ;;  %v644_v3 = vcvt.s32.f32 %v516_v63  ;;  %v520_v15 = vunpack.c.0.s8 %v416_v12  ;;  %v393_v50 = vld [vmem:[%s3114_s12 + $0x8] sm:$0xff] }
  0x35   : > { %v721_v57 = vpack.c.bf16 %v637_v55, %v633_v54  ;;  %v641_v4 = vcvt.s32.f32 %v513_v0  ;;  %v645_v5 = vcvt.s32.f32 %v517_v1  ;;  %v524_v16 = vunpack.c.1.s8 %v416_v12  ;;  %v1508_v1 = vld [vmem:[%s3124_s20 + $0x80] sm:$0xff]  ;;  %p2907_p10 = pnand %p2906_p9, %p2902_p5 }
  0x36   : > { %2686 = vmatpush.bf16.msra.mxu2 %v2541_v8  ;;  %1041 = vmatpush.bf16.msra.mxu0 %v2541_v8  ;;  %v724_v7 = vpack.c.bf16 %v644_v3, %v640_v2  ;;  %v521_v17 = vunpack.c.0.s8 %v417_v13  ;;  %v648_v20 = vcvt.s32.f32 %v520_v15  ;;  %v533_v34 = vunpack.c.3.s8 %v417_v13  ;;  %v1516_v15 = vld [vmem:[%s3124_s20 + $0xc0] sm:$0xff] }
  0x37   : > { %2694 = vmatpush.bf16.msra.mxu3 %v2549_v9  ;;  %1130 = vmatpush.bf16.msra.mxu1 %v2549_v9  ;;  %v725_v8 = vpack.c.bf16 %v645_v5, %v641_v4  ;;  %v2556_v9 = vld [vmem:[#allocation3 + $0x90] sm:$0xff]  ;;  %v652_v21 = vcvt.s32.f32 %v524_v16  ;;  %v424_v51 = vunpack.c.0.s8 %v392_v49  ;;  %v428_v52 = vunpack.c.1.s8 %v392_v49 }
  0x38   : > { %1531 = vperm.xlu0 %2789, %v1493_v6   ;;  %v649_v22 = vcvt.s32.f32 %v521_v17  ;;  %v661_v39 = vcvt.s32.f32 %v533_v34  ;;  %v425_v53 = vunpack.c.0.s8 %v393_v50  ;;  %v429_v54 = vunpack.c.1.s8 %v393_v50  ;;  %v1513_v6 = vld [vmem:[%s3124_s20 + $0xa8] sm:$0xff]  ;;  %v1519_v34 = vld [vmem:[%s3124_s20 + $0xd8] sm:$0xff] }
  0x39   : > { %v556_v60 = vcvt.s32.f32 %v428_v52  ;;  %v432_v16 = vunpack.c.2.s8 %v392_v49  ;;  %v436_v17 = vunpack.c.3.s8 %v392_v49 }
  0x3a   : > { %2687 = vmatpush.bf16.msra.mxu2 %v2540_v10  ;;  %1042 = vmatpush.bf16.msra.mxu0 %v2540_v10  ;;  %v2564_v10 = vld [vmem:[#allocation3 + $0xd0] sm:$0xff]  ;;  %v553_v61 = vcvt.s32.f32 %v425_v53  ;;  %v557_v62 = vcvt.s32.f32 %v429_v54 }
  0x3b   : > { %2695 = vmatpush.bf16.msra.mxu3 %v2548_v11  ;;  %1131 = vmatpush.bf16.msra.mxu1 %v2548_v11  ;;  %v1494_v11 = vld [vmem:[%s3124_s20 + $0x10] sm:$0xff] }
  0x3c   : > { %1536 = vperm.xlu1 %2790, %v1494_v11   ;;  %v681_v0 = vpack.c.bf16 %v557_v62, %v553_v61 }
  0x3e   : > { %2688 = vmatpush.bf16.msra.mxu2 %v2539_v18  ;;  %1043 = vmatpush.bf16.msra.mxu0 %v2539_v18  ;;  %v525_v18 = vunpack.c.1.s8 %v417_v13 }
  0x3f   : > { %2696 = vmatpush.bf16.msra.mxu3 %v2547_v19  ;;  %1132 = vmatpush.bf16.msra.mxu1 %v2547_v19  ;;  %v1495_v19 = vld [vmem:[%s3124_s20 + $0x18] sm:$0xff] }
  0x40   : > { %1556 = vperm.xlu0 %2789, %v1498_v14   ;;  %v653_v23 = vcvt.s32.f32 %v525_v18  ;;  %v1511_v14 = vld [vmem:[%s3124_s20 + $0x98] sm:$0xff]  ;;  %v433_v18 = vunpack.c.2.s8 %v393_v50 }
  0x42   : > { %2689 = vmatpush.bf16.msra.mxu2 %v2538_v24  ;;  %1044 = vmatpush.bf16.msra.mxu0 %v2538_v24  ;;  %v1501_v24 = vld [vmem:[%s3124_s20 + $0x48] sm:$0xff] }
  0x43   : > { %2697 = vmatpush.bf16.msra.mxu3 %v2546_v25  ;;  %1133 = vmatpush.bf16.msra.mxu1 %v2546_v25  ;;  %v728_v25 = vpack.c.bf16 %v652_v21, %v648_v20 }
  0x44   : > { %1541 = vperm.xlu1 %2790, %v1495_v19   ;;  %v437_v19 = vunpack.c.3.s8 %v393_v50 }
  0x45   : > { %1085 = vmatmul.bf16.vlgmr.msra.gmra.mxu2 %v712_v28  ;;  %v2563_v28 = vld [vmem:[#allocation3 + $0xc8] sm:$0xff] }
  0x46   : > { %1215 = vmatpush.bf16.msrb.mxu2 %v2561_v26  ;;  %1174 = vmatmul.bf16.vlgmr.msra.gmra.mxu3 %v713_v29  ;;  %v729_v26 = vpack.c.bf16 %v653_v23, %v649_v22  ;;  %v1499_v29 = vld [vmem:[%s3124_s20 + $0x38] sm:$0xff] }
  0x47   : > { %1304 = vmatpush.bf16.msrb.mxu3 %v2569_v27  ;;  %v2555_v27 = vld [vmem:[#allocation3 + $0x88] sm:$0xff]  ;;  %1134 = vmatmul.bf16.vlgmr.msra.gmra.mxu1 %v681_v0  ;;  %v1520_v0 = vld [vmem:[%s3124_s20 + $0xe0] sm:$0xff] }
  0x48   : > { %1571 = vperm.xlu0 %2789, %v1501_v24   ;;  %v560_v24 = vcvt.s32.f32 %v432_v16 }
  0x4a   : > { %1216 = vmatpush.bf16.msrb.mxu2 %v2560_v30  ;;  %v1504_v30 = vld [vmem:[%s3124_s20 + $0x60] sm:$0xff] }
  0x4b   : > { %1305 = vmatpush.bf16.msrb.mxu3 %v2568_v31  ;;  %v528_v31 = vunpack.c.2.s8 %v416_v12 }
  0x4c   : > { %1561 = vperm.xlu1 %2790, %v1499_v29  }
  0x4d   : > { %v656_v36 = vcvt.s32.f32 %v528_v31 }
  0x4e   : > { %1217 = vmatpush.bf16.msrb.mxu2 %v2559_v32  ;;  %v532_v32 = vunpack.c.3.s8 %v416_v12 }
  0x4f   : > { %1306 = vmatpush.bf16.msrb.mxu3 %v2567_v33  ;;  %v529_v33 = vunpack.c.2.s8 %v417_v13  ;;  %v1496_v13 = vld [vmem:[%s3124_s20 + $0x20] sm:$0xff] }
  0x50   : > { %1586 = vperm.xlu0 %2789, %v1504_v30   ;;  %v660_v37 = vcvt.s32.f32 %v532_v32  ;;  %1546 = vperm.xlu2 %2791, %v1496_v13   ;;  %v1497_v32 = vld [vmem:[%s3124_s20 + $0x28] sm:$0xff] }
  0x51   : > { %v657_v38 = vcvt.s32.f32 %v529_v33  ;;  %v1514_v33 = vld [vmem:[%s3124_s20 + $0xb0] sm:$0xff] }
  0x52   : > { %1218 = vmatpush.bf16.msrb.mxu2 %v2558_v44  ;;  %v732_v41 = vpack.c.bf16 %v660_v37, %v656_v36  ;;  %v421_v44 = vld [vmem:[%s3114_s12 + $0xe8] sm:$0xff]  ;;  %v395_v36 = vld [vmem:[%s3114_s12 + $0x18] sm:$0xff] }
  0x53   : > { %1307 = vmatpush.bf16.msrb.mxu3 %v2566_v45  ;;  %v2554_v45 = vld [vmem:[#allocation3 + $0x80] sm:$0xff]  ;;  %v545_v11 = vunpack.c.2.s8 %v421_v44  ;;  %v549_v12 = vunpack.c.3.s8 %v421_v44 }
  0x54   : > { %1576 = vperm.xlu1 %2790, %v1502_v35   ;;  %v394_v35 = vld [vmem:[%s3114_s12 + $0x10] sm:$0xff] }
  0x55   : > { %1090 = vmatmul.bf16.gmra.mxu2 %v716_v42  ;;  %v733_v42 = vpack.c.bf16 %v661_v39, %v657_v38  ;;  %v673_v22 = vcvt.s32.f32 %v545_v11  ;;  %v677_v23 = vcvt.s32.f32 %v549_v12  ;;  %v426_v37 = vunpack.c.0.s8 %v394_v35 }
  0x56   : > { %1179 = vmatmul.bf16.gmra.mxu3 %v717_v43  ;;  %1219 = vmatpush.bf16.msrb.mxu2 %v2557_v58  ;;  %v420_v43 = vld [vmem:[%s3114_s12 + $0xe0] sm:$0xff]  ;;  %v541_v58 = vunpack.c.1.s8 %v421_v44  ;;  %v430_v38 = vunpack.c.1.s8 %v394_v35  ;;  %v427_v39 = vunpack.c.0.s8 %v395_v36 }
  0x57   : > { %1308 = vmatpush.bf16.msrb.mxu3 %v2565_v59  ;;  %v536_v55 = vunpack.c.0.s8 %v420_v43  ;;  %v552_v59 = vcvt.s32.f32 %v424_v51  ;;  %v741_v31 = vpack.c.bf16 %v677_v23, %v673_v22  ;;  %v554_v51 = vcvt.s32.f32 %v426_v37 }
  0x58   : > { %1601 = vperm.xlu0 %2789, %v1507_v40   ;;  %v669_v5 = vcvt.s32.f32 %v541_v58  ;;  %1551 = vperm.xlu2 %2791, %v1497_v32   ;;  %v431_v40 = vunpack.c.1.s8 %v395_v36  ;;  %v558_v52 = vcvt.s32.f32 %v430_v38  ;;  %v555_v53 = vcvt.s32.f32 %v427_v39  ;;  %v399_v32 = vld [vmem:[%s3114_s12 + $0x38] sm:$0xff] }
  0x59   : > { %v680_v63 = vpack.c.bf16 %v556_v60, %v552_v59  ;;  %v664_v2 = vcvt.s32.f32 %v536_v55  ;;  %v443_v37 = vunpack.c.0.s8 %v399_v32  ;;  %v447_v38 = vunpack.c.1.s8 %v399_v32 }
  0x5a   : > { %1220 = vmatpush.bf16.msrb.mxu2 %v2556_v9  ;;  %v544_v9 = vunpack.c.2.s8 %v420_v43  ;;  %v559_v54 = vcvt.s32.f32 %v431_v40  ;;  %v682_v61 = vpack.c.bf16 %v558_v52, %v554_v51  ;;  %v2575_v40 = vld [vmem:[#allocation6 + $0x28] sm:$0xff] }
  0x5b   : > { %1309 = vmatpush.bf16.msrb.mxu3 %v2564_v10  ;;  %1045 = vmatmul.bf16.vlgmr.msra.gmra.mxu0 %v680_v63  ;;  %v548_v10 = vunpack.c.3.s8 %v420_v43  ;;  %v1503_v63 = vld [vmem:[%s3124_s20 + $0x58] sm:$0xff]  ;;  %v575_v51 = vcvt.s32.f32 %v447_v38 }
  0x5c   : > { %1591 = vperm.xlu1 %2790, %v1505_v47   ;;  %v672_v20 = vcvt.s32.f32 %v544_v9  ;;  %v683_v62 = vpack.c.bf16 %v559_v54, %v555_v53  ;;  %v1506_v9 = vld [vmem:[%s3124_s20 + $0x70] sm:$0xff] }
  0x5d   : > { %v676_v21 = vcvt.s32.f32 %v548_v10  ;;  %v1523_v10 = vld [vmem:[%s3124_s20 + $0xf8] sm:$0xff] }
  0x5e   : > { %1221 = vmatpush.bf16.msrb.mxu2 %v2555_v27  ;;  %v565_v27 = vcvt.s32.f32 %v437_v19 }
  0x5f   : > { %1310 = vmatpush.bf16.msrb.mxu3 %v2563_v28  ;;  %v740_v30 = vpack.c.bf16 %v676_v21, %v672_v20 }
  0x60   : > { %1616 = vperm.xlu0 %2789, %v1510_v48  }
  0x62   : > { %1222 = vmatpush.bf16.msrb.mxu2 %v2554_v45  ;;  %v396_v45 = vld [vmem:[%s3114_s12 + $0x20] sm:$0xff] }
  0x63   : > { %1311 = vmatpush.bf16.msrb.mxu3 %v2562_v46  ;;  %v397_v46 = vld [vmem:[%s3114_s12 + $0x28] sm:$0xff]  ;;  %v440_v47 = vunpack.c.0.s8 %v396_v45  ;;  %v444_v48 = vunpack.c.1.s8 %v396_v45  ;;  %v448_v11 = vunpack.c.2.s8 %v396_v45  ;;  %v452_v12 = vunpack.c.3.s8 %v396_v45 }
  0x64   : > { %1606 = vperm.xlu1 %2790, %v1508_v1   ;;  %v441_v49 = vunpack.c.0.s8 %v397_v46  ;;  %v445_v50 = vunpack.c.1.s8 %v397_v46  ;;  %v449_v13 = vunpack.c.2.s8 %v397_v46 }
  0x65   : > { %1095 = vmatmul.bf16.gmra.mxu2 %v720_v56  ;;  %v540_v56 = vunpack.c.1.s8 %v420_v43  ;;  %v1517_v43 = vld [vmem:[%s3124_s20 + $0xc8] sm:$0xff]  ;;  %v568_v55 = vcvt.s32.f32 %v440_v47  ;;  %v576_v19 = vcvt.s32.f32 %v448_v11  ;;  %v580_v20 = vcvt.s32.f32 %v452_v12 }
  0x66   : > { %1184 = vmatmul.bf16.gmra.mxu3 %v721_v57  ;;  %v537_v57 = vunpack.c.0.s8 %v421_v44  ;;  %v1522_v44 = vld [vmem:[%s3124_s20 + $0xf0] sm:$0xff]  ;;  %v573_v58 = vcvt.s32.f32 %v445_v50  ;;  %v577_v21 = vcvt.s32.f32 %v449_v13  ;;  %v571_v50 = vcvt.s32.f32 %v443_v37 }
  0x67   : > { %v668_v3 = vcvt.s32.f32 %v540_v56  ;;  %v572_v56 = vcvt.s32.f32 %v444_v48  ;;  %v692_v23 = vpack.c.bf16 %v580_v20, %v576_v19 }
  0x68   : > { %v665_v4 = vcvt.s32.f32 %v537_v57  ;;  %1631 = vperm.xlu0 %2789, %v1513_v6   ;;  %v569_v57 = vcvt.s32.f32 %v441_v49  ;;  %v439_v6 = vunpack.c.3.s8 %v395_v36 }
  0x69   : > { %v688_v59 = vpack.c.bf16 %v572_v56, %v568_v55 }
  0x6a   : > { %v689_v60 = vpack.c.bf16 %v573_v58, %v569_v57 }
  0x6c   : > { %1621 = vperm.xlu1 %2790, %v1511_v14   ;;  %v453_v14 = vunpack.c.3.s8 %v397_v46 }
  0x6e   : > { %v581_v22 = vcvt.s32.f32 %v453_v14 }
  0x70   : > { %1646 = vperm.xlu0 %2789, %v1516_v15  }
  0x74   : > { %1636 = vperm.xlu1 %2790, %v1514_v33  }
  0x75   : > { %1100 = vmatmul.bf16.gmra.mxu2 %v724_v7  ;;  %v736_v7 = vpack.c.bf16 %v668_v3, %v664_v2  ;;  %v434_v3 = vunpack.c.2.s8 %v394_v35 }
  0x76   : > { %1189 = vmatmul.bf16.gmra.mxu3 %v725_v8  ;;  %v737_v8 = vpack.c.bf16 %v669_v5, %v665_v4  ;;  %v438_v4 = vunpack.c.3.s8 %v394_v35  ;;  %v435_v5 = vunpack.c.2.s8 %v395_v36 }
  0x77   : > { %v562_v15 = vcvt.s32.f32 %v434_v3 }
  0x78   : > { %1661 = vperm.xlu0 %2789, %v1519_v34   ;;  %v566_v16 = vcvt.s32.f32 %v438_v4  ;;  %v451_v4 = vunpack.c.2.s8 %v399_v32 }
  0x7c   : > { %1651 = vperm.xlu1 %2790, %v1517_v43   ;;  %v401_v43 = vld [vmem:[%s3114_s12 + $0x48] sm:$0xff] }
  0x7d   : > { %v457_v46 = vunpack.c.0.s8 %v401_v43  ;;  %v461_v47 = vunpack.c.1.s8 %v401_v43  ;;  %v465_v12 = vunpack.c.2.s8 %v401_v43  ;;  %v469_v13 = vunpack.c.3.s8 %v401_v43  ;;  %v405_v43 = vld [vmem:[%s3114_s12 + $0x68] sm:$0xff] }
  0x7f   : > { %v585_v54 = vcvt.s32.f32 %v457_v46  ;;  %v589_v55 = vcvt.s32.f32 %v461_v47  ;;  %v593_v20 = vcvt.s32.f32 %v465_v12  ;;  %v473_v46 = vunpack.c.0.s8 %v405_v43 }
  0x80   : > { %1676 = vperm.xlu0 %2789, %v1522_v44   ;;  %v477_v47 = vunpack.c.1.s8 %v405_v43  ;;  %v481_v12 = vunpack.c.2.s8 %v405_v43 }
  0x81   : > { %v697_v57 = vpack.c.bf16 %v589_v55, %v585_v54  ;;  %v601_v54 = vcvt.s32.f32 %v473_v46 }
  0x82   : > { %v605_v55 = vcvt.s32.f32 %v477_v47 }
  0x84   : > { %1666 = vperm.xlu1 %2790, %v1520_v0  }
  0x85   : > { %1105 = vmatmul.bf16.gmra.mxu2 %v728_v25  ;;  %v564_v25 = vcvt.s32.f32 %v436_v17  ;;  %v563_v17 = vcvt.s32.f32 %v435_v5  ;;  %v455_v5 = vunpack.c.3.s8 %v399_v32  ;;  %v403_v32 = vld [vmem:[%s3114_s12 + $0x58] sm:$0xff] }
  0x86   : > { %1194 = vmatmul.bf16.gmra.mxu3 %v729_v26  ;;  %v561_v26 = vcvt.s32.f32 %v433_v18  ;;  %v567_v18 = vcvt.s32.f32 %v439_v6  ;;  %v459_v37 = vunpack.c.0.s8 %v403_v32  ;;  %v463_v38 = vunpack.c.1.s8 %v403_v32 }
  0x87   : > { %v684_v28 = vpack.c.bf16 %v564_v25, %v560_v24  ;;  %v693_v24 = vpack.c.bf16 %v581_v22, %v577_v21  ;;  %v597_v21 = vcvt.s32.f32 %v469_v13  ;;  %v485_v13 = vunpack.c.3.s8 %v405_v43 }
  0x88   : > { %v685_v29 = vpack.c.bf16 %v565_v27, %v561_v26 }
  0x89   : > { %1050 = vmatmul.bf16.gmra.mxu0 %v684_v28  ;;  %v686_v28 = vpack.c.bf16 %v566_v16, %v562_v15  ;;  %v579_v16 = vcvt.s32.f32 %v451_v4  ;;  %v467_v4 = vunpack.c.2.s8 %v403_v32 }
  0x8a   : > { %1139 = vmatmul.bf16.gmra.mxu1 %v685_v29  ;;  %v687_v29 = vpack.c.bf16 %v567_v18, %v563_v17  ;;  %v583_v17 = vcvt.s32.f32 %v455_v5  ;;  %v471_v5 = vunpack.c.3.s8 %v403_v32  ;;  %v407_v32 = vld [vmem:[%s3114_s12 + $0x78] sm:$0xff] }
  0x8c   : > { %1681 = vperm.xlu1 %2790, %v1523_v10  }
  0x95   : > { %1110 = vmatmul.bf16.gmra.mxu2 %v732_v41  ;;  %v2577_v41 = vld [vmem:[#allocation6 + $0x38] sm:$0xff] }
  0x96   : > { %1199 = vmatmul.bf16.gmra.mxu3 %v733_v42  ;;  %v1500_v42 = vld [vmem:[%s3124_s20 + $0x40] sm:$0xff]  ;;  %1800 = vmatpush.bf16.msrb.mxu0 %v2577_v41 }
  0x97   : > { %1566 = vperm.xlu2 %2791, %v1500_v42   ;;  %v1512_v41 = vld [vmem:[%s3124_s20 + $0xa0] sm:$0xff] }
  0x98   : > { %v400_v42 = vld [vmem:[%s3114_s12 + $0x40] sm:$0xff] }
  0x99   : > { %1055 = vmatmul.bf16.gmra.mxu0 %v688_v59  ;;  %v456_v44 = vunpack.c.0.s8 %v400_v42  ;;  %v460_v45 = vunpack.c.1.s8 %v400_v42  ;;  %v464_v10 = vunpack.c.2.s8 %v400_v42  ;;  %v468_v11 = vunpack.c.3.s8 %v400_v42  ;;  %v404_v42 = vld [vmem:[%s3114_s12 + $0x60] sm:$0xff] }
  0x9a   : > { %1144 = vmatmul.bf16.gmra.mxu1 %v689_v60 }
  0x9b   : > { %v584_v52 = vcvt.s32.f32 %v456_v44  ;;  %v588_v53 = vcvt.s32.f32 %v460_v45  ;;  %v592_v18 = vcvt.s32.f32 %v464_v10  ;;  %v596_v19 = vcvt.s32.f32 %v468_v11 }
  0x9c   : > { %v472_v44 = vunpack.c.0.s8 %v404_v42  ;;  %v476_v45 = vunpack.c.1.s8 %v404_v42  ;;  %v480_v10 = vunpack.c.2.s8 %v404_v42  ;;  %v484_v11 = vunpack.c.3.s8 %v404_v42  ;;  %v2571_v42 = vld [vmem:[#allocation6 + $0x8] sm:$0xff] }
  0x9d   : > { %v696_v56 = vpack.c.bf16 %v588_v53, %v584_v52  ;;  %v700_v22 = vpack.c.bf16 %v596_v19, %v592_v18 }
  0x9e   : > { %v600_v52 = vcvt.s32.f32 %v472_v44  ;;  %v604_v53 = vcvt.s32.f32 %v476_v45  ;;  %v608_v18 = vcvt.s32.f32 %v480_v10  ;;  %v612_v19 = vcvt.s32.f32 %v484_v11 }
  0x9f   : > { %1581 = vperm.xlu2 %2791, %v1503_v63   ;;  %v1515_v63 = vld [vmem:[%s3124_s20 + $0xb8] sm:$0xff] }
  0xa5   : > { %1115 = vmatmul.bf16.gmra.mxu2 %v736_v7 }
  0xa6   : > { %1204 = vmatmul.bf16.gmra.mxu3 %v737_v8  ;;  %v2576_v8 = vld [vmem:[#allocation6 + $0x30] sm:$0xff] }
  0xa7   : > { %1596 = vperm.xlu2 %2791, %v1506_v9   ;;  %1801 = vmatpush.bf16.msrb.mxu0 %v2576_v8  ;;  %v2574_v8 = vld [vmem:[#allocation6 + $0x20] sm:$0xff]  ;;  %v1518_v9 = vld [vmem:[%s3124_s20 + $0xd0] sm:$0xff] }
  0xa9   : > { %1060 = vmatmul.bf16.gmra.mxu0 %v692_v23  ;;  %v701_v23 = vpack.c.bf16 %v597_v21, %v593_v20  ;;  %v609_v20 = vcvt.s32.f32 %v481_v12  ;;  %v613_v21 = vcvt.s32.f32 %v485_v13 }
  0xaa   : > { %1149 = vmatmul.bf16.gmra.mxu1 %v693_v24 }
  0xab   : > { %1802 = vmatpush.bf16.msrb.mxu0 %v2575_v40 }
  0xaf   : > { %1803 = vmatpush.bf16.msrb.mxu0 %v2574_v8 }
  0xb5   : > { %1120 = vmatmul.bf16.gmra.mxu2 %v740_v30  ;;  %v1509_v30 = vld [vmem:[%s3124_s20 + $0x88] sm:$0xff] }
  0xb6   : > { %1209 = vmatmul.bf16.gmra.mxu3 %v741_v31  ;;  %1611 = vperm.xlu2 %2791, %v1509_v30   ;;  %v398_v31 = vld [vmem:[%s3114_s12 + $0x30] sm:$0xff]  ;;  %v1521_v30 = vld [vmem:[%s3124_s20 + $0xe8] sm:$0xff] }
  0xb7   : > { %v442_v35 = vunpack.c.0.s8 %v398_v31  ;;  %v446_v36 = vunpack.c.1.s8 %v398_v31  ;;  %v454_v3 = vunpack.c.3.s8 %v398_v31 }
  0xb9   : > { %v570_v48 = vcvt.s32.f32 %v442_v35  ;;  %v574_v49 = vcvt.s32.f32 %v446_v36  ;;  %1065 = vmatmul.bf16.gmra.mxu0 %v696_v56  ;;  %v582_v15 = vcvt.s32.f32 %v454_v3  ;;  %v704_v56 = vpack.c.bf16 %v604_v53, %v600_v52 }
  0xba   : > { %1154 = vmatmul.bf16.gmra.mxu1 %v697_v57  ;;  %v705_v57 = vpack.c.bf16 %v605_v55, %v601_v54 }
  0xbe   : > { %1626 = vperm.xlu2 %2791, %v1512_v41   ;;  %v2573_v41 = vld [vmem:[#allocation6 + $0x18] sm:$0xff] }
  0xbf   : > { %1804 = vmatpush.bf16.msrb.mxu0 %v2573_v41  ;;  %v479_v41 = vunpack.c.1.s8 %v407_v32 }
  0xc1   : > { %v607_v46 = vcvt.s32.f32 %v479_v41 }
  0xc4   : > { %v1135_v53 = vpop.f32.mrf.mxu1 }
  0xc5   : > { %1223 = vmatmul.bf16.vlgmr.msrb.gmra.mxu2 %v682_v61  ;;  %v690_v61 = vpack.c.bf16 %v574_v49, %v570_v48 }
  0xc6   : > { %1312 = vmatmul.bf16.vlgmr.msrb.gmra.mxu3 %v683_v62  ;;  %v691_v62 = vpack.c.bf16 %v575_v51, %v571_v50  ;;  %1641 = vperm.xlu2 %2791, %v1515_v63   ;;  %v587_v50 = vcvt.s32.f32 %v459_v37  ;;  %v591_v51 = vcvt.s32.f32 %v463_v38  ;;  %v475_v38 = vunpack.c.0.s8 %v407_v32 }
  0xc8   : > { %v1086_v1 = vpop.f32.mrf.mxu2  ;;  %v699_v63 = vpack.c.bf16 %v591_v51, %v587_v50  ;;  %v603_v45 = vcvt.s32.f32 %v475_v38 }
  0xc9   : > { %v1175_v2 = vpop.f32.mrf.mxu3  ;;  %1070 = vmatmul.bf16.gmra.mxu0 %v700_v22  ;;  %v708_v22 = vpack.c.bf16 %v612_v19, %v608_v18 }
  0xca   : > { %v3161_v7 = vadd.f32 %v1175_v2, %v1086_v1  ;;  %v450_v2 = vunpack.c.2.s8 %v398_v31  ;;  %1159 = vmatmul.bf16.gmra.mxu1 %v701_v23  ;;  %v402_v31 = vld [vmem:[%s3114_s12 + $0x50] sm:$0xff]  ;;  %v709_v23 = vpack.c.bf16 %v613_v21, %v609_v20  ;;  %v707_v51 = vpack.c.bf16 %v607_v46, %v603_v45 }
  0xcb   : > { %v458_v35 = vunpack.c.0.s8 %v402_v31  ;;  %v462_v36 = vunpack.c.1.s8 %v402_v31  ;;  %v470_v3 = vunpack.c.3.s8 %v402_v31 }
  0xcc   : > { %v578_v14 = vcvt.s32.f32 %v450_v2  ;;  %v466_v2 = vunpack.c.2.s8 %v402_v31  ;;  %v406_v31 = vld [vmem:[%s3114_s12 + $0x70] sm:$0xff] }
  0xcd   : > { %v586_v48 = vcvt.s32.f32 %v458_v35  ;;  %v590_v49 = vcvt.s32.f32 %v462_v36  ;;  %v474_v35 = vunpack.c.0.s8 %v406_v31  ;;  %v478_v37 = vunpack.c.1.s8 %v406_v31 }
  0xce   : > { %1656 = vperm.xlu2 %2791, %v1518_v9   ;;  %v2572_v9 = vld [vmem:[#allocation6 + $0x10] sm:$0xff] }
  0xcf   : > { %1805 = vmatpush.bf16.msrb.mxu0 %v2572_v9  ;;  %v602_v43 = vcvt.s32.f32 %v474_v35  ;;  %v606_v44 = vcvt.s32.f32 %v478_v37 }
  0xd0   : > { %v1088_v25 = vpop.f32.mrf.mxu2 }
  0xd1   : > { %v1177_v26 = vpop.f32.mrf.mxu3  ;;  %v706_v50 = vpack.c.bf16 %v606_v44, %v602_v43 }
  0xd2   : > { %v3165_v27 = vadd.f32 %v1177_v26, %v1088_v25 }
  0xd3   : > { %1806 = vmatpush.bf16.msrb.mxu0 %v2571_v42  ;;  %v2585_v42 = vld [vmem:[#allocation8 + $0x38] sm:$0xff] }
  0xd4   : > { %2001 = vmatpush.bf16.msrb.mxu1 %v2585_v42 }
  0xd5   : > { %1228 = vmatmul.bf16.gmra.mxu2 %v686_v28  ;;  %v694_v28 = vpack.c.bf16 %v582_v15, %v578_v14  ;;  %v594_v14 = vcvt.s32.f32 %v466_v2  ;;  %v598_v15 = vcvt.s32.f32 %v470_v3  ;;  %v2570_v3 = vld [vmem:[#allocation6] sm:$0xff] }
  0xd6   : > { %1317 = vmatmul.bf16.gmra.mxu3 %v687_v29  ;;  %v695_v29 = vpack.c.bf16 %v583_v17, %v579_v16  ;;  %1671 = vperm.xlu2 %2791, %v1521_v30   ;;  %v595_v16 = vcvt.s32.f32 %v467_v4  ;;  %v599_v17 = vcvt.s32.f32 %v471_v5  ;;  %v1137_v5 = vpop.f32.mrf.mxu1 }
  0xd7   : > { %1807 = vmatpush.bf16.msrb.mxu0 %v2570_v3 }
  0xd8   : > { %v1091_v33 = vpop.f32.mrf.mxu2  ;;  %v703_v30 = vpack.c.bf16 %v599_v17, %v595_v16  ;;  %v1046_v52 = vpop.f32.mrf.mxu0 }
  0xd9   : > { %v1180_v34 = vpop.f32.mrf.mxu3  ;;  %1075 = vmatmul.bf16.gmra.mxu0 %v704_v56  ;;  %v482_v56 = vunpack.c.2.s8 %v406_v31  ;;  %v1136_v46 = vadd.f32 %v1135_v53, %v1046_v52 }
  0xda   : > { %v3170_v39 = vadd.f32 %v1180_v34, %v1091_v33  ;;  %1164 = vmatmul.bf16.gmra.mxu1 %v705_v57 }
  0xe0   : > { %v1093_v58 = vpop.f32.mrf.mxu2  ;;  %v1048_v4 = vpop.f32.mrf.mxu0 }
  0xe1   : > { %v1182_v59 = vpop.f32.mrf.mxu3 }
  0xe2   : > { %v3175_v60 = vadd.f32 %v1182_v59, %v1093_v58 }
  0xe5   : > { %1233 = vmatmul.bf16.gmra.mxu2 %v690_v61 }
  0xe6   : > { %1322 = vmatmul.bf16.gmra.mxu3 %v691_v62  ;;  %v698_v62 = vpack.c.bf16 %v590_v49, %v586_v48 }
  0xe8   : > { %v1096_v0 = vpop.f32.mrf.mxu2 }
  0xe9   : > { %v1185_v1 = vpop.f32.mrf.mxu3  ;;  %1080 = vmatmul.bf16.gmra.mxu0 %v708_v22 }
  0xea   : > { %v3178_v6 = vadd.f32 %v1185_v1, %v1096_v0  ;;  %1169 = vmatmul.bf16.gmra.mxu1 %v709_v23 }
  0xf0   : > { %v1098_v24 = vpop.f32.mrf.mxu2 }
  0xf1   : > { %v1187_v25 = vpop.f32.mrf.mxu3 }
  0xf2   : > { %v3181_v26 = vadd.f32 %v1187_v25, %v1098_v24 }
  0xf5   : > { %1238 = vmatmul.bf16.gmra.mxu2 %v694_v28 }
  0xf6   : > { %1327 = vmatmul.bf16.gmra.mxu3 %v695_v29  ;;  %v702_v29 = vpack.c.bf16 %v598_v15, %v594_v14  ;;  %v410_v14 = vld [vmem:[%s3114_s12 + $0x90] sm:$0xff]  ;;  %v411_v15 = vld [vmem:[%s3114_s12 + $0x98] sm:$0xff] }
  0xf7   : > { %v490_v18 = vunpack.c.0.s8 %v410_v14  ;;  %v494_v20 = vunpack.c.1.s8 %v410_v14  ;;  %v491_v21 = vunpack.c.0.s8 %v411_v15  ;;  %v495_v22 = vunpack.c.1.s8 %v411_v15 }
  0xf8   : > { %v1101_v33 = vpop.f32.mrf.mxu2  ;;  %v498_v45 = vunpack.c.2.s8 %v410_v14 }
  0xf9   : > { %v1190_v34 = vpop.f32.mrf.mxu3 }
  0xfa   : > { %v3186_v40 = vadd.f32 %v1190_v34, %v1101_v33 }
 0x100   : > { %v1103_v58 = vpop.f32.mrf.mxu2 }
 0x101   : > { %v1192_v59 = vpop.f32.mrf.mxu3 }
 0x102   : > { %v3190_v61 = vadd.f32 %v1192_v59, %v1103_v58  ;;  %v486_v58 = vunpack.c.3.s8 %v406_v31  ;;  %v483_v59 = vunpack.c.2.s8 %v407_v32  ;;  %v623_v31 = vcvt.s32.f32 %v495_v22 }
 0x105   : > { %1243 = vmatmul.bf16.gmra.mxu2 %v698_v62  ;;  %v487_v62 = vunpack.c.3.s8 %v407_v32 }
 0x106   : > { %1332 = vmatmul.bf16.gmra.mxu3 %v699_v63  ;;  %v610_v63 = vcvt.s32.f32 %v482_v56  ;;  %v1051_v23 = vpop.f32.mrf.mxu0 }
 0x107   : > { %v615_v2 = vcvt.s32.f32 %v487_v62 }
 0x108   : > { %v1106_v0 = vpop.f32.mrf.mxu2 }
 0x109   : > { %v1195_v1 = vpop.f32.mrf.mxu3 }
 0x10a   : > { %v3192_v8 = vadd.f32 %v1195_v1, %v1106_v0  ;;  %v614_v0 = vcvt.s32.f32 %v486_v58  ;;  %v611_v1 = vcvt.s32.f32 %v483_v59 }
 0x10c   : > { %v710_v12 = vpack.c.bf16 %v614_v0, %v610_v63  ;;  %v711_v13 = vpack.c.bf16 %v615_v2, %v611_v1  ;;  %v1138_v0 = vadd.f32 %v1137_v5, %v1048_v4 }
 0x10e   : > { %v1053_v38 = vpop.f32.mrf.mxu0 }
 0x110   : > { %v1108_v24 = vpop.f32.mrf.mxu2 }
 0x111   : > { %v1197_v25 = vpop.f32.mrf.mxu3 }
 0x112   : > { %v3194_v28 = vadd.f32 %v1197_v25, %v1108_v24  ;;  %v1140_v24 = vpop.f32.mrf.mxu1  ;;  %v618_v25 = vcvt.s32.f32 %v490_v18 }
 0x115   : > { %1248 = vmatmul.bf16.gmra.mxu2 %v702_v29  ;;  %v622_v29 = vcvt.s32.f32 %v494_v20 }
 0x116   : > { %1337 = vmatmul.bf16.gmra.mxu3 %v703_v30  ;;  %v619_v30 = vcvt.s32.f32 %v491_v21  ;;  %v1056_v62 = vpop.f32.mrf.mxu0 }
 0x117   : > { %v714_v35 = vpack.c.bf16 %v622_v29, %v618_v25  ;;  %v1141_v25 = vadd.f32 %v1140_v24, %v1051_v23 }
 0x118   : > { %v1111_v33 = vpop.f32.mrf.mxu2  ;;  %v715_v37 = vpack.c.bf16 %v623_v31, %v619_v30 }
 0x119   : > { %v1200_v34 = vpop.f32.mrf.mxu3 }
 0x11a   : > { %v3198_v36 = vadd.f32 %v1200_v34, %v1111_v33  ;;  %v1142_v41 = vpop.f32.mrf.mxu1 }
 0x11e   : > { %v1058_v4 = vpop.f32.mrf.mxu0 }
 0x120   : > { %v1113_v47 = vpop.f32.mrf.mxu2 }
 0x121   : > { %v1202_v48 = vpop.f32.mrf.mxu3 }
 0x122   : > { %v3200_v49 = vadd.f32 %v1202_v48, %v1113_v47  ;;  %v502_v47 = vunpack.c.3.s8 %v410_v14  ;;  %v499_v48 = vunpack.c.2.s8 %v411_v15  ;;  %v1145_v63 = vpop.f32.mrf.mxu1 }
 0x124   : > { %v630_v56 = vcvt.s32.f32 %v502_v47  ;;  %v627_v58 = vcvt.s32.f32 %v499_v48 }
 0x125   : > { %1253 = vmatmul.bf16.gmra.mxu2 %v706_v50  ;;  %v503_v50 = vunpack.c.3.s8 %v411_v15  ;;  %v414_v15 = vld [vmem:[%s3114_s12 + $0xb0] sm:$0xff] }
 0x126   : > { %1342 = vmatmul.bf16.gmra.mxu3 %v707_v51  ;;  %v3212_v51 = vpop.permute.xlu0 %1526  ;;  %v506_v22 = vunpack.c.0.s8 %v414_v15  ;;  %v510_v29 = vunpack.c.1.s8 %v414_v15 }
 0x127   : > { %v631_v59 = vcvt.s32.f32 %v503_v50 }
 0x128   : > { %v1116_v54 = vpop.f32.mrf.mxu2 }
 0x129   : > { %v1205_v55 = vpop.f32.mrf.mxu3  ;;  %v719_v53 = vpack.c.bf16 %v631_v59, %v627_v58 }
 0x12a   : > { %v3202_v57 = vadd.f32 %v1205_v55, %v1116_v54  ;;  %v626_v54 = vcvt.s32.f32 %v498_v45  ;;  %v1147_v5 = vpop.f32.mrf.mxu1 }
 0x12c   : > { %v718_v52 = vpack.c.bf16 %v630_v56, %v626_v54 }
 0x130   : > { %v1118_v9 = vpop.f32.mrf.mxu2 }
 0x131   : > { %v1207_v10 = vpop.f32.mrf.mxu3 }
 0x132   : > { %v3204_v11 = vadd.f32 %v1207_v10, %v1118_v9  ;;  %v1150_v23 = vpop.f32.mrf.mxu1 }
 0x135   : > { %1258 = vmatmul.bf16.gmra.mxu2 %v710_v12  ;;  %v3214_v12 = vpop.permute.xlu0 %1531 }
 0x136   : > { %1347 = vmatmul.bf16.gmra.mxu3 %v711_v13 }
 0x138   : > { %v1121_v16 = vpop.f32.mrf.mxu2 }
 0x139   : > { %v1210_v17 = vpop.f32.mrf.mxu3 }
 0x13a   : > { %v3208_v19 = vadd.f32 %v1210_v17, %v1121_v16  ;;  %v2584_v16 = vld [vmem:[#allocation8 + $0x30] sm:$0xff]  ;;  %v415_v17 = vld [vmem:[%s3114_s12 + $0xb8] sm:$0xff] }
 0x13b   : > { %2002 = vmatpush.bf16.msrb.mxu1 %v2584_v16  ;;  %v507_v30 = vunpack.c.0.s8 %v415_v17  ;;  %v511_v31 = vunpack.c.1.s8 %v415_v17 }
 0x13d   : > { %v635_v42 = vcvt.s32.f32 %v507_v30 }
 0x140   : > { %v1123_v32 = vpop.f32.mrf.mxu2 }
 0x141   : > { %v1212_v33 = vpop.f32.mrf.mxu3 }
 0x142   : > { %v3210_v34 = vadd.f32 %v1212_v33, %v1123_v32  ;;  %v3220_v32 = vpop.permute.xlu1 %1536  ;;  %v634_v33 = vcvt.s32.f32 %v506_v22 }
 0x145   : > { %1263 = vmatmul.bf16.gmra.mxu2 %v714_v35 }
 0x146   : > { %1352 = vmatmul.bf16.gmra.mxu3 %v715_v37  ;;  %v638_v37 = vcvt.s32.f32 %v510_v29 }
 0x148   : > { %v1224_v43 = vpop.f32.mrf.mxu2  ;;  %v722_v50 = vpack.c.bf16 %v638_v37, %v634_v33 }
 0x149   : > { %v1313_v44 = vpop.f32.mrf.mxu3  ;;  %v1225_v55 = vadd.f32 %v1224_v43, %v1136_v46  ;;  %v639_v43 = vcvt.s32.f32 %v511_v31 }
 0x14a   : > { %v3222_v56 = vpop.permute.xlu1 %1541 }
 0x14b   : > { %v1314_v3 = vadd.f32 %v1313_v44, %v1225_v55  ;;  %v1143_v44 = vadd.f32 %v1142_v41, %v1053_v38  ;;  %v723_v54 = vpack.c.bf16 %v639_v43, %v635_v42  ;;  %v1061_v55 = vpop.f32.mrf.mxu0 }
 0x14d   : > { %v1684_v13 = vmul.f32 %v3212_v51, %v1314_v3  ;;  %v1146_v3 = vadd.f32 %v1145_v63, %v1056_v62 }
 0x150   : > { %v1226_v1 = vpop.f32.mrf.mxu2 }
 0x151   : > { %v1315_v2 = vpop.f32.mrf.mxu3  ;;  %v1227_v9 = vadd.f32 %v1226_v1, %v1138_v0  ;;  %v2583_v0 = vld [vmem:[#allocation8 + $0x28] sm:$0xff] }
 0x152   : > { %2003 = vmatpush.bf16.msrb.mxu1 %v2583_v0 }
 0x153   : > { %v1316_v10 = vadd.f32 %v1315_v2, %v1227_v9  ;;  %v514_v2 = vunpack.c.2.s8 %v414_v15  ;;  %v518_v9 = vunpack.c.3.s8 %v414_v15 }
 0x155   : > { %v1685_v14 = vmul.f32 %v3214_v12, %v1316_v10  ;;  %1268 = vmatmul.bf16.gmra.mxu2 %v718_v52  ;;  %v515_v52 = vunpack.c.2.s8 %v415_v17  ;;  %v3226_v10 = vpop.permute.xlu2 %1546  ;;  %v642_v16 = vcvt.s32.f32 %v514_v2 }
 0x156   : > { %1357 = vmatmul.bf16.gmra.mxu3 %v719_v53  ;;  %v519_v53 = vunpack.c.3.s8 %v415_v17 }
 0x157   : > { %v1716_v18 = vpack.c.bf16 %v1685_v14, %v1684_v13  ;;  %v1063_v13 = vpop.f32.mrf.mxu0  ;;  %v1152_v14 = vpop.f32.mrf.mxu1 }
 0x158   : > { %v1229_v20 = vpop.f32.mrf.mxu2  ;;  %v647_v22 = vcvt.s32.f32 %v519_v53  ;;  %v1153_v2 = vadd.f32 %v1152_v14, %v1063_v13  ;;  %v2581_v13 = vld [vmem:[#allocation8 + $0x18] sm:$0xff] }
 0x159   : > { %v1318_v21 = vpop.f32.mrf.mxu3  ;;  %1808 = vmatmul.bf16.vlgmr.msrb.gmra.mxu0 %v1716_v18  ;;  %v1230_v35 = vadd.f32 %v1229_v20, %v1141_v25  ;;  %v646_v20 = vcvt.s32.f32 %v518_v9  ;;  %v1148_v25 = vadd.f32 %v1147_v5, %v1058_v4  ;;  %v2582_v4 = vld [vmem:[#allocation8 + $0x20] sm:$0xff]  ;;  %v419_v5 = vld [vmem:[%s3114_s12 + $0xd8] sm:$0xff] }
 0x15a   : > { %2004 = vmatpush.bf16.msrb.mxu1 %v2582_v4  ;;  %v535_v4 = vunpack.c.3.s8 %v419_v5 }
 0x15b   : > { %v1319_v47 = vadd.f32 %v1318_v21, %v1230_v35  ;;  %v643_v21 = vcvt.s32.f32 %v515_v52  ;;  %v726_v63 = vpack.c.bf16 %v646_v20, %v642_v16 }
 0x15d   : > { %v1686_v58 = vmul.f32 %v3220_v32, %v1319_v47  ;;  %v727_v15 = vpack.c.bf16 %v647_v22, %v643_v21  ;;  %v3228_v17 = vpop.permute.xlu2 %1551 }
 0x15e   : > { %2005 = vmatpush.bf16.msrb.mxu1 %v2581_v13 }
 0x15f   : > { %v1066_v42 = vpop.f32.mrf.mxu0  ;;  %v1155_v43 = vpop.f32.mrf.mxu1 }
 0x160   : > { %v1231_v45 = vpop.f32.mrf.mxu2 }
 0x161   : > { %v1320_v46 = vpop.f32.mrf.mxu3  ;;  %v1232_v48 = vadd.f32 %v1231_v45, %v1143_v44  ;;  %v418_v44 = vld [vmem:[%s3114_s12 + $0xd0] sm:$0xff] }
 0x163   : > { %v1321_v24 = vadd.f32 %v1320_v46, %v1232_v48  ;;  %v522_v48 = vunpack.c.0.s8 %v418_v44 }
 0x165   : > { %1273 = vmatmul.bf16.gmra.mxu2 %v722_v50  ;;  %v1687_v59 = vmul.f32 %v3222_v56, %v1321_v24  ;;  %v1151_v50 = vadd.f32 %v1150_v23, %v1061_v55  ;;  %v523_v24 = vunpack.c.0.s8 %v419_v5  ;;  %v3234_v55 = vpop.permute.xlu0 %1556  ;;  %v3236_v23 = vpop.permute.xlu1 %1561 }
 0x166   : > { %1362 = vmatmul.bf16.gmra.mxu3 %v723_v54  ;;  %v526_v54 = vunpack.c.1.s8 %v418_v44 }
 0x167   : > { %v1717_v1 = vpack.c.bf16 %v1687_v59, %v1686_v58  ;;  %v527_v58 = vunpack.c.1.s8 %v419_v5  ;;  %v650_v59 = vcvt.s32.f32 %v522_v48  ;;  %v1157_v9 = vpop.f32.mrf.mxu1 }
 0x168   : > { %v1234_v38 = vpop.f32.mrf.mxu2 }
 0x169   : > { %v1323_v41 = vpop.f32.mrf.mxu3  ;;  %1813 = vmatmul.bf16.gmra.mxu0 %v1717_v1  ;;  %v1235_v18 = vadd.f32 %v1234_v38, %v1146_v3  ;;  %v654_v1 = vcvt.s32.f32 %v526_v54  ;;  %v651_v38 = vcvt.s32.f32 %v523_v24  ;;  %v1068_v3 = vpop.f32.mrf.mxu0 }
 0x16a   : > { %v1158_v54 = vadd.f32 %v1157_v9, %v1068_v3  ;;  %v422_v3 = vld [vmem:[%s3114_s12 + $0xf0] sm:$0xff] }
 0x16b   : > { %v1324_v31 = vadd.f32 %v1323_v41, %v1235_v18  ;;  %v655_v41 = vcvt.s32.f32 %v527_v58  ;;  %v730_v20 = vpack.c.bf16 %v654_v1, %v650_v59  ;;  %v2580_v9 = vld [vmem:[#allocation8 + $0x10] sm:$0xff] }
 0x16c   : > { %2006 = vmatpush.bf16.msrb.mxu1 %v2580_v9  ;;  %v550_v9 = vunpack.c.3.s8 %v422_v3 }
 0x16d   : > { %v1688_v35 = vmul.f32 %v3226_v10, %v1324_v31  ;;  %v731_v21 = vpack.c.bf16 %v655_v41, %v651_v38 }
 0x170   : > { %v1236_v29 = vpop.f32.mrf.mxu2 }
 0x171   : > { %v1325_v30 = vpop.f32.mrf.mxu3  ;;  %v1237_v62 = vadd.f32 %v1236_v29, %v1148_v25 }
 0x173   : > { %v1326_v33 = vadd.f32 %v1325_v30, %v1237_v62  ;;  %v530_v62 = vunpack.c.2.s8 %v418_v44 }
 0x175   : > { %1278 = vmatmul.bf16.gmra.mxu2 %v726_v63  ;;  %v1689_v37 = vmul.f32 %v3228_v17, %v1326_v33  ;;  %v1156_v63 = vadd.f32 %v1155_v43, %v1066_v42  ;;  %v1160_v33 = vpop.f32.mrf.mxu1 }
 0x176   : > { %1367 = vmatmul.bf16.gmra.mxu3 %v727_v15  ;;  %v1071_v15 = vpop.f32.mrf.mxu0 }
 0x177   : > { %v1718_v45 = vpack.c.bf16 %v1689_v37, %v1688_v35  ;;  %v534_v35 = vunpack.c.3.s8 %v418_v44  ;;  %v531_v37 = vunpack.c.2.s8 %v419_v5  ;;  %v3240_v44 = vpop.permute.xlu0 %1571  ;;  %v3242_v5 = vpop.permute.xlu2 %1566 }
 0x178   : > { %v1239_v46 = vpop.f32.mrf.mxu2 }
 0x179   : > { %v1328_v47 = vpop.f32.mrf.mxu3  ;;  %1818 = vmatmul.bf16.gmra.mxu0 %v1718_v45  ;;  %v1240_v0 = vadd.f32 %v1239_v46, %v1151_v50  ;;  %v658_v45 = vcvt.s32.f32 %v530_v62  ;;  %v659_v48 = vcvt.s32.f32 %v531_v37  ;;  %v663_v50 = vcvt.s32.f32 %v535_v4 }
 0x17b   : > { %v1329_v16 = vadd.f32 %v1328_v47, %v1240_v0  ;;  %v662_v47 = vcvt.s32.f32 %v534_v35  ;;  %v735_v42 = vpack.c.bf16 %v663_v50, %v659_v48 }
 0x17d   : > { %v1690_v25 = vmul.f32 %v3234_v55, %v1329_v16  ;;  %v734_v1 = vpack.c.bf16 %v662_v47, %v658_v45  ;;  %v1162_v41 = vpop.f32.mrf.mxu1 }
 0x17e   : > { %v1073_v38 = vpop.f32.mrf.mxu0 }
 0x17f   : > { %v1163_v4 = vadd.f32 %v1162_v41, %v1073_v38 }
 0x180   : > { %v1241_v52 = vpop.f32.mrf.mxu2 }
 0x181   : > { %v1330_v53 = vpop.f32.mrf.mxu3  ;;  %v1242_v18 = vadd.f32 %v1241_v52, %v1153_v2 }
 0x183   : > { %v1331_v22 = vadd.f32 %v1330_v53, %v1242_v18  ;;  %v423_v53 = vld [vmem:[%s3114_s12 + $0xf8] sm:$0xff]  ;;  %s2187_s12 = scalar_lea.sflag [#allocation5], %s334_s30 }
 0x184   : > { %v543_v13 = vunpack.c.1.s8 %v423_v53 }
 0x185   : > { %1283 = vmatmul.bf16.gmra.mxu2 %v730_v20  ;;  %v1691_v29 = vmul.f32 %v3236_v23, %v1331_v22  ;;  %v1161_v22 = vadd.f32 %v1160_v33, %v1071_v15  ;;  %v1165_v62 = vpop.f32.mrf.mxu1  ;;  %v3248_v15 = vpop.permute.xlu1 %1576 }
 0x186   : > { %1372 = vmatmul.bf16.gmra.mxu3 %v731_v21  ;;  %v538_v21 = vunpack.c.0.s8 %v422_v3  ;;  %v671_v37 = vcvt.s32.f32 %v543_v13  ;;  %v3250_v33 = vpop.permute.xlu2 %1581 }
 0x187   : > { %v1719_v14 = vpack.c.bf16 %v1691_v29, %v1690_v25  ;;  %v542_v25 = vunpack.c.1.s8 %v422_v3  ;;  %v539_v29 = vunpack.c.0.s8 %v423_v53 }
 0x188   : > { %v1244_v30 = vpop.f32.mrf.mxu2 }
 0x189   : > { %v1333_v31 = vpop.f32.mrf.mxu3  ;;  %1823 = vmatmul.bf16.gmra.mxu0 %v1719_v14  ;;  %v1245_v46 = vadd.f32 %v1244_v30, %v1156_v63  ;;  %v666_v14 = vcvt.s32.f32 %v538_v21  ;;  %v670_v63 = vcvt.s32.f32 %v542_v25  ;;  %v667_v35 = vcvt.s32.f32 %v539_v29 }
 0x18b   : > { %v1334_v59 = vadd.f32 %v1333_v31, %v1245_v46  ;;  %v1076_v31 = vpop.f32.mrf.mxu0  ;;  %v738_v50 = vpack.c.bf16 %v670_v63, %v666_v14 }
 0x18d   : > { %v1692_v2 = vmul.f32 %v3242_v5, %v1334_v59 }
 0x190   : > { %v1246_v24 = vpop.f32.mrf.mxu2 }
 0x191   : > { %v1335_v58 = vpop.f32.mrf.mxu3  ;;  %v1247_v0 = vadd.f32 %v1246_v24, %v1158_v54  ;;  %v739_v54 = vpack.c.bf16 %v671_v37, %v667_v35 }
 0x193   : > { %v1336_v43 = vadd.f32 %v1335_v58, %v1247_v0  ;;  %v2579_v0 = vld [vmem:[#allocation8 + $0x8] sm:$0xff] }
 0x194   : > { %2007 = vmatpush.bf16.msrb.mxu1 %v2579_v0 }
 0x195   : > { %v1693_v52 = vmul.f32 %v3240_v44, %v1336_v43  ;;  %1288 = vmatmul.bf16.gmra.mxu2 %v734_v1  ;;  %v1078_v1 = vpop.f32.mrf.mxu0 }
 0x196   : > { %1377 = vmatmul.bf16.gmra.mxu3 %v735_v42  ;;  %v1167_v42 = vpop.f32.mrf.mxu1 }
 0x197   : > { %v1720_v16 = vpack.c.bf16 %v1693_v52, %v1692_v2  ;;  %v546_v2 = vunpack.c.2.s8 %v422_v3  ;;  %v1166_v52 = vadd.f32 %v1165_v62, %v1076_v31  ;;  %v1168_v13 = vadd.f32 %v1167_v42, %v1078_v1  ;;  %v3254_v31 = vpop.permute.xlu0 %1586  ;;  %v3256_v3 = vpop.permute.xlu1 %1591 }
 0x198   : > { %v1249_v18 = vpop.f32.mrf.mxu2 }
 0x199   : > { %v1338_v20 = vpop.f32.mrf.mxu3  ;;  %1828 = vmatmul.bf16.gmra.mxu0 %v1720_v16  ;;  %v1250_v30 = vadd.f32 %v1249_v18, %v1161_v22  ;;  %v547_v16 = vunpack.c.2.s8 %v423_v53  ;;  %v551_v18 = vunpack.c.3.s8 %v423_v53  ;;  %v678_v22 = vcvt.s32.f32 %v550_v9 }
 0x19b   : > { %v1339_v47 = vadd.f32 %v1338_v20, %v1250_v30  ;;  %v674_v20 = vcvt.s32.f32 %v546_v2  ;;  %v675_v25 = vcvt.s32.f32 %v547_v16  ;;  %v679_v29 = vcvt.s32.f32 %v551_v18  ;;  %v3262_v16 = vpop.permute.xlu2 %1596 }
 0x19d   : > { %v1694_v58 = vmul.f32 %v3248_v15, %v1339_v47  ;;  %v742_v37 = vpack.c.bf16 %v678_v22, %v674_v20 }
 0x19f   : > { %v3260_v9 = vpop.permute.xlu0 %1601 }
 0x1a0   : > { %v1251_v45 = vpop.f32.mrf.mxu2 }
 0x1a1   : > { %v1340_v46 = vpop.f32.mrf.mxu3  ;;  %v1252_v48 = vadd.f32 %v1251_v45, %v1163_v4  ;;  %v743_v4 = vpack.c.bf16 %v679_v29, %v675_v25  ;;  %v1081_v45 = vpop.f32.mrf.mxu0 }
 0x1a3   : > { %v1341_v24 = vadd.f32 %v1340_v46, %v1252_v48  ;;  %v1170_v46 = vpop.f32.mrf.mxu1  ;;  %v2578_v48 = vld [vmem:[#allocation8] sm:$0xff] }
 0x1a4   : > { %2008 = vmatpush.bf16.msrb.mxu1 %v2578_v48 }
 0x1a5   : > { %v1695_v59 = vmul.f32 %v3250_v33, %v1341_v24  ;;  %1293 = vmatmul.bf16.gmra.mxu2 %v738_v50 }
 0x1a6   : > { %1382 = vmatmul.bf16.gmra.mxu3 %v739_v54 }
 0x1a7   : > { %v1721_v43 = vpack.c.bf16 %v1695_v59, %v1694_v58  ;;  %v1171_v58 = vadd.f32 %v1170_v46, %v1081_v45 }
 0x1a8   : > { %v1254_v38 = vpop.f32.mrf.mxu2 }
 0x1a9   : > { %v1343_v41 = vpop.f32.mrf.mxu3  ;;  %1833 = vmatmul.bf16.gmra.mxu0 %v1721_v43  ;;  %v1255_v21 = vadd.f32 %v1254_v38, %v1166_v52  ;;  %v1083_v59 = vpop.f32.mrf.mxu0 }
 0x1ab   : > { %v1344_v63 = vadd.f32 %v1343_v41, %v1255_v21  ;;  %v1172_v0 = vpop.f32.mrf.mxu1 }
 0x1ac   : > { %v1173_v42 = vadd.f32 %v1172_v0, %v1083_v59 }
 0x1ad   : > { %v1696_v53 = vmul.f32 %v3254_v31, %v1344_v63 }
 0x1b0   : > { %v1256_v14 = vpop.f32.mrf.mxu2 }
 0x1b1   : > { %v1345_v30 = vpop.f32.mrf.mxu3  ;;  %v1257_v35 = vadd.f32 %v1256_v14, %v1168_v13 }
 0x1b3   : > { %v1346_v47 = vadd.f32 %v1345_v30, %v1257_v35 }
 0x1b5   : > { %v1697_v62 = vmul.f32 %v3256_v3, %v1346_v47  ;;  %1298 = vmatmul.bf16.gmra.mxu2 %v742_v37  ;;  %v3268_v37 = vpop.permute.xlu1 %1606 }
 0x1b6   : > { %1387 = vmatmul.bf16.gmra.mxu3 %v743_v4  ;;  %v3270_v4 = vpop.permute.xlu2 %1611 }
 0x1b7   : > { %v1722_v50 = vpack.c.bf16 %v1697_v62, %v1696_v53 }
 0x1b8   : > { %v1259_v54 = vpop.f32.mrf.mxu2 }
 0x1b9   : > { %v1348_v24 = vpop.f32.mrf.mxu3  ;;  %1838 = vmatmul.bf16.gmra.mxu0 %v1722_v50  ;;  %v1260_v1 = vadd.f32 %v1259_v54, %v1171_v58 }
 0x1bb   : > { %v1349_v41 = vadd.f32 %v1348_v24, %v1260_v1 }
 0x1bd   : > { %v1698_v18 = vmul.f32 %v3262_v16, %v1349_v41 }
 0x1c0   : > { %v1261_v43 = vpop.f32.mrf.mxu2 }
 0x1c1   : > { %v1350_v38 = vpop.f32.mrf.mxu3  ;;  %v1262_v2 = vadd.f32 %v1261_v43, %v1173_v42 }
 0x1c3   : > { %v1351_v52 = vadd.f32 %v1350_v38, %v1262_v2  ;;  %v3283_v2 = vpop.permute.xlu0 %1616 }
 0x1c5   : > { %v1699_v20 = vmul.f32 %v3260_v9, %v1351_v52  ;;  %v3285_v52 = vpop.permute.xlu1 %1621 }
 0x1c7   : > { %v1723_v21 = vpack.c.bf16 %v1699_v20, %v1698_v18 }
 0x1c8   : > { %v1264_v22 = vpop.f32.mrf.mxu2 }
 0x1c9   : > { %v1353_v25 = vpop.f32.mrf.mxu3  ;;  %1843 = vmatmul.bf16.gmra.mxu0 %v1723_v21  ;;  %v1265_v29 = vadd.f32 %v1264_v22, %v3161_v7  ;;  %v3277_v7 = vld [vmem:[%s3463_s4] ss:$0 sm:$0xff] }
 0x1cb   : > { %v1354_v30 = vadd.f32 %v1353_v25, %v1265_v29 }
 0x1cd   : > { %v1700_v45 = vmul.f32 %v3268_v37, %v1354_v30 }
 0x1d0   : > { %v1266_v13 = vpop.f32.mrf.mxu2 }
 0x1d1   : > { %v1355_v14 = vpop.f32.mrf.mxu3  ;;  %v1267_v63 = vadd.f32 %v1266_v13, %v3165_v27 }
 0x1d3   : > { %v1356_v35 = vadd.f32 %v1355_v14, %v1267_v63 }
 0x1d5   : > { %v1701_v46 = vmul.f32 %v3270_v4, %v1356_v35 }
 0x1d6   : > { %v1809_v47 = vpop.f32.mrf.mxu0 }
 0x1d7   : > { %v1724_v53 = vpack.c.bf16 %v1701_v46, %v1700_v45  ;;  %v1810_v27 = vadd.f32 %v3277_v7, %v1809_v47 }
 0x1d8   : > { %v1269_v62 = vpop.f32.mrf.mxu2 }
 0x1d9   : > { %v1358_v48 = vpop.f32.mrf.mxu3  ;;  %1848 = vmatmul.bf16.gmra.mxu0 %v1724_v53  ;;  %v1270_v50 = vadd.f32 %v1269_v62, %v3170_v39  ;;  %v1889_v0 = vmax.f32 %v1810_v27, 0.0  ;;  %v3295_v27 = vpop.permute.xlu2 %1626 }
 0x1db   : > { %v1359_v1 = vadd.f32 %v1358_v48, %v1270_v50  ;;  %v3293_v48 = vpop.permute.xlu0 %1631 }
 0x1dd   : > { %v1702_v18 = vmul.f32 %v3283_v2, %v1359_v1 }
 0x1de   : > { %v1811_v54 = vpop.f32.mrf.mxu0 }
 0x1df   : > { %v1812_v24 = vadd.f32 %v3277_v7, %v1811_v54 }
 0x1e0   : > { %v1271_v58 = vpop.f32.mrf.mxu2 }
 0x1e1   : > { %v1360_v59 = vpop.f32.mrf.mxu3  ;;  %v1890_v42 = vmax.f32 %v1812_v24, 0.0  ;;  %v1272_v43 = vadd.f32 %v1271_v58, %v3175_v60 }
 0x1e3   : > { %v1361_v38 = vadd.f32 %v1360_v59, %v1272_v43  ;;  %v1921_v41 = vpack.c.bf16 %v1890_v42, %v1889_v0 }
 0x1e5   : > { %v1703_v39 = vmul.f32 %v3285_v52, %v1361_v38  ;;  %2009 = vmatmul.bf16.vlgmr.msrb.gmra.mxu1 %v1921_v41 }
 0x1e6   : > { %v1814_v20 = vpop.f32.mrf.mxu0 }
 0x1e7   : > { %v1725_v21 = vpack.c.bf16 %v1703_v39, %v1702_v18  ;;  %v1815_v29 = vadd.f32 %v3277_v7, %v1814_v20 }
 0x1e8   : > { %v1274_v22 = vpop.f32.mrf.mxu2 }
 0x1e9   : > { %v1363_v25 = vpop.f32.mrf.mxu3  ;;  %1853 = vmatmul.bf16.gmra.mxu0 %v1725_v21  ;;  %v1275_v60 = vadd.f32 %v1274_v22, %v3178_v6  ;;  %v1891_v35 = vmax.f32 %v1815_v29, 0.0  ;;  %v3305_v29 = vpop.permute.xlu2 %1641 }
 0x1eb   : > { %v1364_v45 = vadd.f32 %v1363_v25, %v1275_v60  ;;  %v3303_v25 = vpop.permute.xlu1 %1636 }
 0x1ed   : > { %v1704_v50 = vmul.f32 %v3295_v27, %v1364_v45 }
 0x1ee   : > { %v1816_v13 = vpop.f32.mrf.mxu0 }
 0x1ef   : > { %v1817_v14 = vadd.f32 %v3277_v7, %v1816_v13 }
 0x1f0   : > { %v1276_v30 = vpop.f32.mrf.mxu2 }
 0x1f1   : > { %v1365_v63 = vpop.f32.mrf.mxu3  ;;  %v1892_v46 = vmax.f32 %v1817_v14, 0.0  ;;  %v1277_v47 = vadd.f32 %v1276_v30, %v3181_v26 }
 0x1f3   : > { %v1366_v53 = vadd.f32 %v1365_v63, %v1277_v47  ;;  %v1922_v62 = vpack.c.bf16 %v1892_v46, %v1891_v35 }
 0x1f5   : > { %v1705_v6 = vmul.f32 %v3293_v48, %v1366_v53  ;;  %2014 = vmatmul.bf16.gmra.mxu1 %v1922_v62 }
 0x1f6   : > { %v1819_v54 = vpop.f32.mrf.mxu0 }
 0x1f7   : > { %v1726_v24 = vpack.c.bf16 %v1705_v6, %v1704_v50  ;;  %v1820_v0 = vadd.f32 %v3277_v7, %v1819_v54 }
 0x1f8   : > { %v1279_v58 = vpop.f32.mrf.mxu2 }
 0x1f9   : > { %v1368_v59 = vpop.f32.mrf.mxu3  ;;  %1858 = vmatmul.bf16.gmra.mxu0 %v1726_v24  ;;  %v1280_v26 = vadd.f32 %v1279_v58, %v3186_v40  ;;  %v1893_v41 = vmax.f32 %v1820_v0, 0.0  ;;  %v3315_v0 = vpop.permute.xlu1 %1651 }
 0x1fb   : > { %v1369_v18 = vadd.f32 %v1368_v59, %v1280_v26  ;;  %v3313_v59 = vpop.permute.xlu0 %1646 }
 0x1fd   : > { %v1706_v60 = vmul.f32 %v3303_v25, %v1369_v18 }
 0x1fe   : > { %v1821_v1 = vpop.f32.mrf.mxu0 }
 0x1ff   : > { %v1822_v42 = vadd.f32 %v3277_v7, %v1821_v1 }
 0x200   : > { %v1281_v43 = vpop.f32.mrf.mxu2 }
 0x201   : > { %v1370_v38 = vpop.f32.mrf.mxu3  ;;  %v1894_v39 = vmax.f32 %v1822_v42, 0.0  ;;  %v1282_v20 = vadd.f32 %v1281_v43, %v3190_v61 }
 0x203   : > { %v1371_v21 = vadd.f32 %v1370_v38, %v1282_v20  ;;  %v1923_v22 = vpack.c.bf16 %v1894_v39, %v1893_v41 }
 0x205   : > { %v1707_v40 = vmul.f32 %v3305_v29, %v1371_v21  ;;  %2019 = vmatmul.bf16.gmra.mxu1 %v1923_v22 }
 0x206   : > { %v1824_v13 = vpop.f32.mrf.mxu0 }
 0x207   : > { %v1727_v14 = vpack.c.bf16 %v1707_v40, %v1706_v60  ;;  %v1825_v35 = vadd.f32 %v3277_v7, %v1824_v13 }
 0x208   : > { %v1284_v30 = vpop.f32.mrf.mxu2 }
 0x209   : > { %v1373_v63 = vpop.f32.mrf.mxu3  ;;  %1863 = vmatmul.bf16.gmra.mxu0 %v1727_v14  ;;  %v1285_v61 = vadd.f32 %v1284_v30, %v3192_v8  ;;  %v1895_v62 = vmax.f32 %v1825_v35, 0.0  ;;  %v3325_v35 = vpop.permute.xlu2 %1656 }
 0x20b   : > { %v1374_v50 = vadd.f32 %v1373_v63, %v1285_v61  ;;  %v3323_v63 = vpop.permute.xlu0 %1661 }
 0x20d   : > { %v1708_v26 = vmul.f32 %v3313_v59, %v1374_v50 }
 0x20e   : > { %v1826_v45 = vpop.f32.mrf.mxu0 }
 0x20f   : > { %v1827_v46 = vadd.f32 %v3277_v7, %v1826_v45 }
 0x210   : > { %v1286_v47 = vpop.f32.mrf.mxu2 }
 0x211   : > { %v1375_v53 = vpop.f32.mrf.mxu3  ;;  %v1896_v6 = vmax.f32 %v1827_v46, 0.0  ;;  %v1287_v54 = vadd.f32 %v1286_v47, %v3194_v28 }
 0x213   : > { %v1376_v24 = vadd.f32 %v1375_v53, %v1287_v54  ;;  %v1924_v58 = vpack.c.bf16 %v1896_v6, %v1895_v62 }
 0x215   : > { %v1709_v8 = vmul.f32 %v3315_v0, %v1376_v24  ;;  %2024 = vmatmul.bf16.gmra.mxu1 %v1924_v58 }
 0x216   : > { %v1829_v1 = vpop.f32.mrf.mxu0 }
 0x217   : > { %v1728_v42 = vpack.c.bf16 %v1709_v8, %v1708_v26  ;;  %v1830_v41 = vadd.f32 %v3277_v7, %v1829_v1 }
 0x218   : > { %v1289_v43 = vpop.f32.mrf.mxu2 }
 0x219   : > { %v1378_v38 = vpop.f32.mrf.mxu3  ;;  %1868 = vmatmul.bf16.gmra.mxu0 %v1728_v42  ;;  %v1290_v28 = vadd.f32 %v1289_v43, %v3198_v36  ;;  %v1897_v22 = vmax.f32 %v1830_v41, 0.0  ;;  %v3335_v41 = vpop.permute.xlu2 %1671 }
 0x21b   : > { %v1379_v60 = vadd.f32 %v1378_v38, %v1290_v28  ;;  %v3333_v38 = vpop.permute.xlu1 %1666 }
 0x21d   : > { %v1710_v61 = vmul.f32 %v3325_v35, %v1379_v60 }
 0x21e   : > { %v1831_v18 = vpop.f32.mrf.mxu0 }
 0x21f   : > { %v1832_v39 = vadd.f32 %v3277_v7, %v1831_v18 }
 0x220   : > { %v1291_v20 = vpop.f32.mrf.mxu2 }
 0x221   : > { %v1380_v21 = vpop.f32.mrf.mxu3  ;;  %v1898_v40 = vmax.f32 %v1832_v39, 0.0  ;;  %v1292_v13 = vadd.f32 %v1291_v20, %v3200_v49 }
 0x223   : > { %v1925_v14 = vpack.c.bf16 %v1898_v40, %v1897_v22  ;;  %v1381_v30 = vadd.f32 %v1380_v21, %v1292_v13 }
 0x225   : > { %v1711_v36 = vmul.f32 %v3323_v63, %v1381_v30  ;;  %2029 = vmatmul.bf16.gmra.mxu1 %v1925_v14 }
 0x226   : > { %v1834_v45 = vpop.f32.mrf.mxu0 }
 0x227   : > { %v1729_v46 = vpack.c.bf16 %v1711_v36, %v1710_v61  ;;  %v1835_v62 = vadd.f32 %v3277_v7, %v1834_v45 }
 0x228   : > { %v1294_v47 = vpop.f32.mrf.mxu2 }
 0x229   : > { %v1383_v53 = vpop.f32.mrf.mxu3  ;;  %1873 = vmatmul.bf16.gmra.mxu0 %v1729_v46  ;;  %v1295_v49 = vadd.f32 %v1294_v47, %v3202_v57  ;;  %v1899_v58 = vmax.f32 %v1835_v62, 0.0  ;;  %v3345_v62 = vpop.permute.xlu1 %1681 }
 0x22b   : > { %v1384_v26 = vadd.f32 %v1383_v53, %v1295_v49  ;;  %v3343_v53 = vpop.permute.xlu0 %1676 }
 0x22d   : > { %v1712_v28 = vmul.f32 %v3333_v38, %v1384_v26 }
 0x22e   : > { %v1836_v50 = vpop.f32.mrf.mxu0 }
 0x22f   : > { %v1837_v6 = vadd.f32 %v3277_v7, %v1836_v50 }
 0x230   : > { %v1296_v54 = vpop.f32.mrf.mxu2 }
 0x231   : > { %v1385_v24 = vpop.f32.mrf.mxu3  ;;  %v1900_v8 = vmax.f32 %v1837_v6, 0.0  ;;  %v1297_v1 = vadd.f32 %v1296_v54, %v3204_v11 }
 0x233   : > { %v1926_v42 = vpack.c.bf16 %v1900_v8, %v1899_v58  ;;  %v1386_v43 = vadd.f32 %v1385_v24, %v1297_v1 }
 0x235   : > { %v1713_v57 = vmul.f32 %v3335_v41, %v1386_v43  ;;  %2034 = vmatmul.bf16.gmra.mxu1 %v1926_v42 }
 0x236   : > { %v1839_v18 = vpop.f32.mrf.mxu0 }
 0x237   : > { %v1730_v39 = vpack.c.bf16 %v1713_v57, %v1712_v28  ;;  %v1840_v22 = vadd.f32 %v3277_v7, %v1839_v18 }
 0x238   : > { %v1299_v20 = vpop.f32.mrf.mxu2 }
 0x239   : > { %v1388_v21 = vpop.f32.mrf.mxu3  ;;  %1878 = vmatmul.bf16.gmra.mxu0 %v1730_v39  ;;  %v1300_v11 = vadd.f32 %v1299_v20, %v3208_v19  ;;  %v1901_v14 = vmax.f32 %v1840_v22, 0.0 }
 0x23b   : > { %v1389_v30 = vadd.f32 %v1388_v21, %v1300_v11 }
 0x23d   : > { %v1714_v49 = vmul.f32 %v3343_v53, %v1389_v30 }
 0x23e   : > { %v1841_v60 = vpop.f32.mrf.mxu0 }
 0x23f   : > { %v1842_v40 = vadd.f32 %v3277_v7, %v1841_v60 }
 0x240   : > { %v1301_v13 = vpop.f32.mrf.mxu2 }
 0x241   : > { %v1902_v61 = vmax.f32 %v1842_v40, 0.0  ;;  %v1302_v36 = vadd.f32 %v1301_v13, %v3210_v34  ;;  %v1390_v45 = vpop.f32.mrf.mxu3 }
 0x243   : > { %v1927_v46 = vpack.c.bf16 %v1902_v61, %v1901_v14  ;;  %v1391_v47 = vadd.f32 %v1390_v45, %v1302_v36 }
 0x245   : > { %v1715_v19 = vmul.f32 %v3345_v62, %v1391_v47  ;;  %2039 = vmatmul.bf16.gmra.mxu1 %v1927_v46 }
 0x246   : > { %v1844_v50 = vpop.f32.mrf.mxu0 }
 0x247   : > { %v1731_v6 = vpack.c.bf16 %v1715_v19, %v1714_v49  ;;  %v1845_v54 = vadd.f32 %v3277_v7, %v1844_v50 }
 0x249   : > { %1883 = vmatmul.bf16.gmra.mxu0 %v1731_v6  ;;  %v1903_v58 = vmax.f32 %v1845_v54, 0.0 }
 0x24e   : > { %v1846_v24 = vpop.f32.mrf.mxu0 }
 0x24f   : > { %v1847_v34 = vadd.f32 %v3277_v7, %v1846_v24 }
 0x251   : > { %v1904_v26 = vmax.f32 %v1847_v34, 0.0 }
 0x253   : > { %v1928_v8 = vpack.c.bf16 %v1904_v26, %v1903_v58 }
 0x255   : > { %2044 = vmatmul.bf16.gmra.mxu1 %v1928_v8 }
 0x256   : > { %v1849_v1 = vpop.f32.mrf.mxu0 }
 0x257   : > { %v1850_v42 = vadd.f32 %v3277_v7, %v1849_v1 }
 0x259   : > { %v1905_v57 = vmax.f32 %v1850_v42, 0.0 }
 0x25e   : > { %v1851_v43 = vpop.f32.mrf.mxu0 }
 0x25f   : > { %v1852_v28 = vadd.f32 %v3277_v7, %v1851_v43 }
 0x261   : > { %v1906_v18 = vmax.f32 %v1852_v28, 0.0 }
 0x262   : > { %v2010_v39 = vpop.f32.mrf.mxu1 }
 0x263   : > { %v1929_v20 = vpack.c.bf16 %v1906_v18, %v1905_v57  ;;  %v2090_v11 = vmul.f32 %v2010_v39, %v3212_v51 }
 0x265   : > { %2049 = vmatmul.bf16.gmra.mxu1 %v1929_v20 }
 0x266   : > { %v1854_v21 = vpop.f32.mrf.mxu0 }
 0x267   : > { %v1855_v40 = vadd.f32 %v3277_v7, %v1854_v21 }
 0x269   : > { %v1907_v61 = vmax.f32 %v1855_v40, 0.0 }
 0x26a   : > { %v2012_v22 = vpop.f32.mrf.mxu1 }
 0x26b   : > { %v2091_v60 = vmul.f32 %v2012_v22, %v3214_v12 }
 0x26d   : > { %v2590_v13 = vpack.c.bf16 %v2091_v60, %v2090_v11 }
 0x26e   : > { %v1856_v14 = vpop.f32.mrf.mxu0 }
 0x26f   : > { %2591 = vst [vmem:[%s3359_s13] sm:$0xff] %v2590_v13   ;;  %v1857_v30 = vadd.f32 %v3277_v7, %v1856_v14 }
 0x271   : > { %v1908_v36 = vmax.f32 %v1857_v30, 0.0 }
 0x272   : > { %v2015_v45 = vpop.f32.mrf.mxu1 }
 0x273   : > { %v1930_v46 = vpack.c.bf16 %v1908_v36, %v1907_v61  ;;  %v2092_v12 = vmul.f32 %v2015_v45, %v3220_v32 }
 0x275   : > { %2054 = vmatmul.bf16.gmra.mxu1 %v1930_v46 }
 0x276   : > { %v1859_v47 = vpop.f32.mrf.mxu0 }
 0x277   : > { %v1860_v19 = vadd.f32 %v3277_v7, %v1859_v47 }
 0x279   : > { %v1909_v24 = vmax.f32 %v1860_v19, 0.0 }
 0x27a   : > { %v2017_v51 = vpop.f32.mrf.mxu1 }
 0x27b   : > { %v2093_v49 = vmul.f32 %v2017_v51, %v3222_v56 }
 0x27d   : > { %v2595_v50 = vpack.c.bf16 %v2093_v49, %v2092_v12 }
 0x27e   : > { %v1861_v6 = vpop.f32.mrf.mxu0 }
 0x27f   : > { %2667 = vst [vmem:[%s3359_s13 + $0x8] sm:$0xff] %v2595_v50   ;;  %v1862_v54 = vadd.f32 %v3277_v7, %v1861_v6 }
 0x281   : > { %v1910_v34 = vmax.f32 %v1862_v54, 0.0 }
 0x282   : > { %v2020_v58 = vpop.f32.mrf.mxu1 }
 0x283   : > { %v1931_v26 = vpack.c.bf16 %v1910_v34, %v1909_v24  ;;  %v2094_v42 = vmul.f32 %v2020_v58, %v3226_v10 }
 0x285   : > { %2059 = vmatmul.bf16.gmra.mxu1 %v1931_v26 }
 0x286   : > { %v1864_v8 = vpop.f32.mrf.mxu0 }
 0x287   : > { %v1865_v56 = vadd.f32 %v3277_v7, %v1864_v8 }
 0x289   : > { %v1911_v18 = vmax.f32 %v1865_v56, 0.0 }
 0x28a   : > { %v2022_v1 = vpop.f32.mrf.mxu1 }
 0x28b   : > { %v2095_v32 = vmul.f32 %v2022_v1, %v3228_v17 }
 0x28d   : > { %v2600_v43 = vpack.c.bf16 %v2095_v32, %v2094_v42 }
 0x28e   : > { %v1866_v28 = vpop.f32.mrf.mxu0 }
 0x28f   : > { %2668 = vst [vmem:[%s3359_s13 + $0x10] sm:$0xff] %v2600_v43   ;;  %v1867_v57 = vadd.f32 %v3277_v7, %v1866_v28 }
 0x291   : > { %v1912_v39 = vmax.f32 %v1867_v57, 0.0 }
 0x292   : > { %v2025_v20 = vpop.f32.mrf.mxu1 }
 0x293   : > { %v1932_v21 = vpack.c.bf16 %v1912_v39, %v1911_v18  ;;  %v2096_v60 = vmul.f32 %v2025_v20, %v3234_v55 }
 0x295   : > { %2064 = vmatmul.bf16.gmra.mxu1 %v1932_v21 }
 0x296   : > { %v1869_v22 = vpop.f32.mrf.mxu0 }
 0x297   : > { %v1870_v17 = vadd.f32 %v3277_v7, %v1869_v22 }
 0x299   : > { %v1913_v30 = vmax.f32 %v1870_v17, 0.0 }
 0x29a   : > { %v2027_v11 = vpop.f32.mrf.mxu1 }
 0x29b   : > { %v2097_v10 = vmul.f32 %v2027_v11, %v3236_v23 }
 0x29d   : > { %v2605_v40 = vpack.c.bf16 %v2097_v10, %v2096_v60 }
 0x29e   : > { %v1871_v13 = vpop.f32.mrf.mxu0 }
 0x29f   : > { %2669 = vst [vmem:[%s3359_s13 + $0x18] sm:$0xff] %v2605_v40   ;;  %v1872_v14 = vadd.f32 %v3277_v7, %v1871_v13 }
 0x2a1   : > { %v1914_v61 = vmax.f32 %v1872_v14, 0.0 }
 0x2a2   : > { %v2030_v36 = vpop.f32.mrf.mxu1 }
 0x2a3   : > { %v1933_v45 = vpack.c.bf16 %v1914_v61, %v1913_v30  ;;  %v2098_v51 = vmul.f32 %v2030_v36, %v3242_v5 }
 0x2a5   : > { %2069 = vmatmul.bf16.gmra.mxu1 %v1933_v45 }
 0x2a6   : > { %v1874_v46 = vpop.f32.mrf.mxu0 }
 0x2a7   : > { %v1875_v23 = vadd.f32 %v3277_v7, %v1874_v46 }
 0x2a9   : > { %v1915_v50 = vmax.f32 %v1875_v23, 0.0 }
 0x2aa   : > { %v2032_v47 = vpop.f32.mrf.mxu1 }
 0x2ab   : > { %v2099_v55 = vmul.f32 %v2032_v47, %v3240_v44 }
 0x2ad   : > { %v2610_v12 = vpack.c.bf16 %v2099_v55, %v2098_v51 }
 0x2ae   : > { %v1876_v49 = vpop.f32.mrf.mxu0 }
 0x2af   : > { %2670 = vst [vmem:[%s3359_s13 + $0x20] sm:$0xff] %v2610_v12   ;;  %v1877_v19 = vadd.f32 %v3277_v7, %v1876_v49 }
 0x2b1   : > { %v1916_v6 = vmax.f32 %v1877_v19, 0.0 }
 0x2b2   : > { %v2035_v54 = vpop.f32.mrf.mxu1 }
 0x2b3   : > { %v1934_v24 = vpack.c.bf16 %v1916_v6, %v1915_v50  ;;  %v2100_v26 = vmul.f32 %v2035_v54, %v3248_v15 }
 0x2b5   : > { %2074 = vmatmul.bf16.gmra.mxu1 %v1934_v24 }
 0x2b6   : > { %v1879_v34 = vpop.f32.mrf.mxu0 }
 0x2b7   : > { %v1880_v44 = vadd.f32 %v3277_v7, %v1879_v34 }
 0x2b9   : > { %v1917_v32 = vmax.f32 %v1880_v44, 0.0 }
 0x2ba   : > { %v2037_v58 = vpop.f32.mrf.mxu1 }
 0x2bb   : > { %v2101_v5 = vmul.f32 %v2037_v58, %v3250_v33 }
 0x2bd   : > { %v2615_v8 = vpack.c.bf16 %v2101_v5, %v2100_v26 }
 0x2be   : > { %v1881_v1 = vpop.f32.mrf.mxu0 }
 0x2bf   : > { %2671 = vst [vmem:[%s3359_s13 + $0x28] sm:$0xff] %v2615_v8   ;;  %v1882_v42 = vadd.f32 %v3277_v7, %v1881_v1 }
 0x2c1   : > { %v1918_v56 = vmax.f32 %v1882_v42, 0.0 }
 0x2c2   : > { %v2040_v43 = vpop.f32.mrf.mxu1 }
 0x2c3   : > { %v1935_v28 = vpack.c.bf16 %v1918_v56, %v1917_v32  ;;  %v2102_v39 = vmul.f32 %v2040_v43, %v3254_v31 }
 0x2c5   : > { %2079 = vmatmul.bf16.gmra.mxu1 %v1935_v28 }
 0x2c6   : > { %v1884_v57 = vpop.f32.mrf.mxu0 }
 0x2c7   : > { %v1885_v33 = vadd.f32 %v3277_v7, %v1884_v57 }
 0x2c9   : > { %v1919_v11 = vmax.f32 %v1885_v33, 0.0 }
 0x2ca   : > { %v2042_v18 = vpop.f32.mrf.mxu1 }
 0x2cb   : > { %v2103_v15 = vmul.f32 %v2042_v18, %v3256_v3 }
 0x2cd   : > { %v2620_v20 = vpack.c.bf16 %v2103_v15, %v2102_v39 }
 0x2ce   : > { %v1886_v21 = vpop.f32.mrf.mxu0 }
 0x2cf   : > { %2672 = vst [vmem:[%s3359_s13 + $0x30] sm:$0xff] %v2620_v20   ;;  %v1887_v22 = vadd.f32 %v3277_v7, %v1886_v21 }
 0x2d1   : > { %v1920_v60 = vmax.f32 %v1887_v22, 0.0 }
 0x2d2   : > { %v2045_v10 = vpop.f32.mrf.mxu1 }
 0x2d3   : > { %v1936_v17 = vpack.c.bf16 %v1920_v60, %v1919_v11  ;;  %v2104_v31 = vmul.f32 %v2045_v10, %v3262_v16 }
 0x2d5   : > { %2084 = vmatmul.bf16.gmra.mxu1 %v1936_v17 }
 0x2da   : > { %v2047_v40 = vpop.f32.mrf.mxu1 }
 0x2db   : > { %v2105_v13 = vmul.f32 %v2047_v40, %v3260_v9 }
 0x2dd   : > { %v2625_v3 = vpack.c.bf16 %v2105_v13, %v2104_v31 }
 0x2df   : > { %2673 = vst [vmem:[%s3359_s13 + $0x38] sm:$0xff] %v2625_v3  }
 0x2e2   : > { %v2050_v14 = vpop.f32.mrf.mxu1 }
 0x2e3   : > { %v2106_v61 = vmul.f32 %v2050_v14, %v3268_v37 }
 0x2ea   : > { %v2052_v30 = vpop.f32.mrf.mxu1 }
 0x2eb   : > { %v2107_v7 = vmul.f32 %v2052_v30, %v3270_v4 }
 0x2ed   : > { %v2630_v36 = vpack.c.bf16 %v2107_v7, %v2106_v61 }
 0x2ef   : > { %2674 = vst [vmem:[%s3359_s13 + $0x40] sm:$0xff] %v2630_v36  }
 0x2f2   : > { %v2055_v45 = vpop.f32.mrf.mxu1 }
 0x2f3   : > { %v2108_v47 = vmul.f32 %v2055_v45, %v3283_v2 }
 0x2fa   : > { %v2057_v46 = vpop.f32.mrf.mxu1 }
 0x2fb   : > { %v2109_v16 = vmul.f32 %v2057_v46, %v3285_v52 }
 0x2fd   : > { %v2635_v51 = vpack.c.bf16 %v2109_v16, %v2108_v47 }
 0x2ff   : > { %2675 = vst [vmem:[%s3359_s13 + $0x48] sm:$0xff] %v2635_v51  }
 0x302   : > { %v2060_v9 = vpop.f32.mrf.mxu1 }
 0x303   : > { %v2110_v23 = vmul.f32 %v2060_v9, %v3295_v27 }
 0x30a   : > { %v2062_v55 = vpop.f32.mrf.mxu1 }
 0x30b   : > { %v2111_v37 = vmul.f32 %v2062_v55, %v3293_v48 }
 0x30d   : > { %v2640_v12 = vpack.c.bf16 %v2111_v37, %v2110_v23 }
 0x30f   : > { %2676 = vst [vmem:[%s3359_s13 + $0x50] sm:$0xff] %v2640_v12  }
 0x312   : > { %v2065_v4 = vpop.f32.mrf.mxu1 }
 0x313   : > { %v2112_v19 = vmul.f32 %v2065_v4, %v3303_v25 }
 0x31a   : > { %v2067_v49 = vpop.f32.mrf.mxu1 }
 0x31b   : > { %v2113_v2 = vmul.f32 %v2067_v49, %v3305_v29 }
 0x31d   : > { %v2645_v50 = vpack.c.bf16 %v2113_v2, %v2112_v19 }
 0x31f   : > { %2677 = vst [vmem:[%s3359_s13 + $0x58] sm:$0xff] %v2645_v50  }
 0x322   : > { %v2070_v52 = vpop.f32.mrf.mxu1 }
 0x323   : > { %v2114_v54 = vmul.f32 %v2070_v52, %v3313_v59 }
 0x32a   : > { %v2072_v6 = vpop.f32.mrf.mxu1 }
 0x32b   : > { %v2115_v27 = vmul.f32 %v2072_v6, %v3315_v0 }
 0x32d   : > { %v2650_v48 = vpack.c.bf16 %v2115_v27, %v2114_v54 }
 0x32f   : > { %2678 = vst [vmem:[%s3359_s13 + $0x60] sm:$0xff] %v2650_v48  }
 0x332   : > { %v2075_v24 = vpop.f32.mrf.mxu1 }
 0x333   : > { %v2116_v58 = vmul.f32 %v2075_v24, %v3325_v35 }
 0x33a   : > { %v2077_v34 = vpop.f32.mrf.mxu1 }
 0x33b   : > { %v2117_v25 = vmul.f32 %v2077_v34, %v3323_v63 }
 0x33d   : > { %v2655_v29 = vpack.c.bf16 %v2117_v25, %v2116_v58 }
 0x33f   : > { %2679 = vst [vmem:[%s3359_s13 + $0x68] sm:$0xff] %v2655_v29  }
 0x342   : > { %v2080_v26 = vpop.f32.mrf.mxu1 }
 0x343   : > { %v2118_v44 = vmul.f32 %v2080_v26, %v3333_v38 }
 0x34a   : > { %v2082_v5 = vpop.f32.mrf.mxu1 }
 0x34b   : > { %v2119_v59 = vmul.f32 %v2082_v5, %v3335_v41 }
 0x34d   : > { %v2660_v0 = vpack.c.bf16 %v2119_v59, %v2118_v44 }
 0x34f   : > { %2680 = vst [vmem:[%s3359_s13 + $0x70] sm:$0xff] %v2660_v0  }
 0x352   : > { %v2085_v8 = vpop.f32.mrf.mxu1 }
 0x353   : > { %v2120_v35 = vmul.f32 %v2085_v8, %v3343_v53 }
 0x35a   : > { %v2087_v63 = vpop.f32.mrf.mxu1 }
 0x35b   : > { %v2121_v1 = vmul.f32 %v2087_v63, %v3345_v62 }
 0x35d   : > { %v2665_v38 = vpack.c.bf16 %v2121_v1, %v2120_v35 }
 0x35f   : > { %2681 = vst [vmem:[%s3359_s13 + $0x78] sm:$0xff] %v2665_v38  }
 0x360   : > { %2910 = shalt.err (!%p2907_p10)
}
 0x361   : > { %s2977_s28 = smov 64   ;;  %s2978_s30 = smov 4  }
 0x362   : > { %2710 = dma.vmem_to_hbm [thread:$0]  (%p3054_p4), %s2200_s29, 2048, %s2202_s11, %s2187_s12, %s2977_s28, %s2977_s28, %s2978_s30  }
 0x363 PF: > { %p2732_p11 = scmp.ge.s32.totalorder %s2969_s26, 2  ;;  %s2216_s8 = sand.u32 1, %s2949_s21  }
 0x364   : > { %s2217_s13 = scalar_lea.sflag [#allocation5], %s2216_s8 }
 0x365   : > { %p2723_p12 = pnand %p2732_p11, %p3061_p8 }
 0x367   : > { %p2724_p13 = pneg %p2723_p12 }
 0x369   : > { %2944 = dma.done.wait (%p2724_p13), %s2217_s13, 2048  }
 0x36a   : > { %2946 = vsyncadd (%p2724_p13), %s2217_s13, 4294965248  ;;  %s21_s26 = sadd.s32 1, %s2969_s26   ;;  %s3477_s24 = sld [smem:[#allocation13_spill]] }
 0x36b   : > { %p18_p0 = scmp.ge.s32.totalorder %s21_s26, 4   ;;  %s3478_s25 = sld [smem:[#allocation14_spill]] }
 0x36c   : > { %s3479_s21 = smov %s2953_s22  ;;  %s3480_s22 = smov %s2957_s23 }
 0x36d   : > { %s3481_s23 = smov %s3067_s10  ;;  %20 = sbr.rel (!%p18_p0) target bundleno = 8 (0x8), region = 104 }
 0x372   :  { %2223 = vsyncpa [#allocation4], 1 }
 0x373   :  { %2225 = vsyncpa [#allocation4 + $0x1], 1 }
 0x374   :  { %2226 = vsyncpa [#allocation7], 1 }
 0x375   :  { %2227 = vsyncpa [#allocation5], 1 }
 0x376   :  { %2229 = vsyncpa [#allocation5 + $0x1], 1 }

</bundles_post_ra>
